<compile_context>
chip_gen: v7x
topology: tpu7x:2x2x1
jax: 0.10.0
libtpu: 0.0.40
codegen_flags: <defaults>
</compile_context>

<pallas_src>
import functools

import jax
import jax.numpy as jnp
from jax.experimental import pallas as pl
from jax.experimental.pallas import tpu as pltpu


def _round_up(x, mult):
    return (x + mult - 1) // mult * mult


def _pick_tile_ba(ba, target=1024):
    """Adaptive row tile: >=2 roughly-equal grid steps when possible (v7x
    megacore), multiple of 16 sublanes (bf16 packing), minimal zero padding."""
    steps = max(2, pl.cdiv(ba, target))
    return max(16, _round_up(pl.cdiv(ba, steps), 16))


# --------------------------------------------------------------------------- #
# Kernels
# --------------------------------------------------------------------------- #
def _recon_kernel_tiled_v(h_ref, wu_ref, wv_ref, o_ref, *, n, m, r):
    """9-MXU-pass variant (preferred).

    ubig = h @ Wu_big  -> (TB, r*n*m), lane-dense per rank (U already repeated
                          over the m lanes, 1/r folded in).
    v2   = h @ Wv2     -> (TB, r*m), one MXU pass.
    Per rank k: tile v2's 16-wide slab across the n groups on the VPU/XLU and
    multiply-accumulate in f32 on the VPU.  All ubig slices are 256-lane aligned.
    """
    nm = n * m
    h = h_ref[...].astype(jnp.bfloat16)        # VPU cast; hides under the MXU
    ubig = jnp.dot(h, wu_ref[...], preferred_element_type=jnp.float32)  # (TB, r*nm)
    v2 = jnp.dot(h, wv_ref[...], preferred_element_type=jnp.float32)    # (TB, r*m)

    acc = ubig[:, :nm] * jnp.tile(v2[:, :m], (1, n))     # init with 1st product
    for k in range(1, r):                                # r small & static
        u_k = ubig[:, k * nm:(k + 1) * nm]               # 256-lane aligned slice
        v_k = jnp.tile(v2[:, k * m:(k + 1) * m], (1, n)) # XLU lane replication
        acc = acc + u_k * v_k                            # f32 MAC on the VPU
    o_ref[...] = acc.astype(o_ref.dtype)


def _recon_kernel_expanded_v(h_ref, wu_ref, wv_ref, o_ref, *, n, m, r):
    """Fallback (16 MXU passes): both U and V pre-expanded into the weights, so
    the body is two dots + an unrolled f32 VPU MAC over 256-lane aligned slices."""
    nm = n * m
    h = h_ref[...].astype(jnp.bfloat16)
    ubig = jnp.dot(h, wu_ref[...], preferred_element_type=jnp.float32)  # (TB, r*nm)
    vbig = jnp.dot(h, wv_ref[...], preferred_element_type=jnp.float32)  # (TB, r*nm)
    acc = ubig[:, :nm] * vbig[:, :nm]
    for k in range(1, r):
        acc = acc + ubig[:, k * nm:(k + 1) * nm] * vbig[:, k * nm:(k + 1) * nm]
    o_ref[...] = acc.astype(o_ref.dtype)


# --------------------------------------------------------------------------- #
# One-time weight prep (hoisted out of the per-call path)
# --------------------------------------------------------------------------- #
def prepare_recon_weights(w_u, w_v, *, n, m, r, dtype=jnp.bfloat16):
    """w_u: (n*r, H), w_v: (m*r, H) -- PyTorch nn.Linear weight layout (out, in).

    Returns bf16 MXU operands:
      wu_big: (H, r*n*m)  wu_big[:, k*n*m + i*m + j] = w_u[i*r+k, :] / r
      wv2:    (H, r*m)    wv2[:, k*m + j]            = w_v[j*r+k, :]
      wv_big: (H, r*n*m)  wv_big[:, k*n*m + i*m + j] = w_v[j*r+k, :]   (fallback)
    The 1/r scale is folded into wu_big (exact for power-of-two r).
    """
    H = w_u.shape[1]
    wu = jnp.transpose(w_u.astype(jnp.float32).reshape(n, r, H), (1, 0, 2))  # [k,i,h]
    wu_big = jnp.broadcast_to(wu[:, :, None, :], (r, n, m, H)) / float(r)    # [k,i,j,h]
    wu_big = wu_big.reshape(r * n * m, H).T.astype(dtype)

    wv = jnp.transpose(w_v.astype(jnp.float32).reshape(m, r, H), (1, 0, 2))  # [k,j,h]
    wv2 = wv.reshape(r * m, H).T.astype(dtype)
    wv_big = jnp.broadcast_to(wv[:, None, :, :], (r, n, m, H))               # [k,i,j,h]
    wv_big = wv_big.reshape(r * n * m, H).T.astype(dtype)
    return wu_big, wv2, wv_big


# --------------------------------------------------------------------------- #
# pallas_call wrapper
# --------------------------------------------------------------------------- #
@functools.partial(jax.jit,
                   static_argnames=("n", "m", "r", "tiled_v", "out_dtype",
                                    "max_tile_ba"))
def _recon_forward(h, wu_mat, wv_mat, *, n, m, r, tiled_v, out_dtype,
                   max_tile_ba):
    B, A, H = h.shape
    BA = B * A
    nm = n * m

    tile_ba = _pick_tile_ba(BA, max_tile_ba)
    ba_pad = _round_up(BA, tile_ba)

    h_flat = h.reshape(BA, H)
    if ba_pad != BA:
        h_flat = jnp.pad(h_flat, ((0, ba_pad - BA), (0, 0)))

    kernel = _recon_kernel_tiled_v if tiled_v else _recon_kernel_expanded_v
    wv_cols = wv_mat.shape[1]

    out = pl.pallas_call(
        functools.partial(kernel, n=n, m=m, r=r),
        out_shape=jax.ShapeDtypeStruct((ba_pad, nm), out_dtype),
        grid_spec=pltpu.PrefetchScalarGridSpec(
            num_scalar_prefetch=0,
            grid=(ba_pad // tile_ba,),
            in_specs=[
                pl.BlockSpec((tile_ba, H), lambda i: (i, 0)),      # h row tile
                pl.BlockSpec((H, r * nm), lambda i: (0, 0)),       # Wu_big (resident)
                pl.BlockSpec((H, wv_cols), lambda i: (0, 0)),      # Wv (resident)
            ],
            out_specs=pl.BlockSpec((tile_ba, nm), lambda i: (i, 0)),  # lane-dense
        ),
        compiler_params=pltpu.CompilerParams(
            dimension_semantics=("parallel",),   # v7x: split BA over the 2 TCs
            vmem_limit_bytes=40 * 1024 * 1024,   # covers v5e's small default
        ),
    )(h_flat, wu_mat, wv_mat)

    return out[:BA].reshape(B, A, nm)


_TILED_V_WORKS = None   # resolved on the first call


def recon_decoder_pallas(h, wu_big, wv2, wv_big, *, n, m, r,
                         out_dtype=None, max_tile_ba=1024):
    """Forward pass.  Weights must come from prepare_recon_weights (one-time prep).

    out_dtype=jnp.bfloat16 halves the dominant HBM write traffic (the output is
    8x the input) -- recommended on v5e if downstream tolerates bf16.
    """
    global _TILED_V_WORKS
    out_dtype = h.dtype if out_dtype is None else out_dtype

    if _TILED_V_WORKS is None:
        try:
            out = _recon_forward(h, wu_big, wv2, n=n, m=m, r=r, tiled_v=True,
                                 out_dtype=out_dtype, max_tile_ba=max_tile_ba)
            jax.block_until_ready(out)
            _TILED_V_WORKS = True
            return out
        except Exception:
            # V-side lane replication did not lower -> expanded-V fallback.
            _TILED_V_WORKS = False

    if _TILED_V_WORKS:
        return _recon_forward(h, wu_big, wv2, n=n, m=m, r=r, tiled_v=True,
                              out_dtype=out_dtype, max_tile_ba=max_tile_ba)
    return _recon_forward(h, wu_big, wv_big, n=n, m=m, r=r, tiled_v=False,
                          out_dtype=out_dtype, max_tile_ba=max_tile_ba)


# --------------------------------------------------------------------------- #
# Pure-JAX reference
# --------------------------------------------------------------------------- #
def recon_decoder_ref(h, w_u, w_v, *, n, m, r, cast_bf16=False):
    """Mirrors the PyTorch forward in true f32 (HIGHEST precision).  With
    cast_bf16=True the inputs/weights are first rounded to bf16 to match the
    kernel's MXU operand precision."""
    B, A, H = h.shape
    if cast_bf16:
        h = h.astype(jnp.bfloat16).astype(jnp.float32)
        w_u = w_u.astype(jnp.bfloat16).astype(jnp.float32)
        w_v = w_v.astype(jnp.bfloat16).astype(jnp.float32)
    hp = jax.lax.Precision.HIGHEST
    U = jnp.einsum("bah,oh->bao", h, w_u, precision=hp).reshape(B, A, n, r)
    V = jnp.einsum("bah,oh->bao", h, w_v, precision=hp).reshape(B, A, m, r)
    recon = jnp.einsum("banr,bamr->banm", U, V, precision=hp) / r
    return recon.reshape(B, A, n * m)


if __name__ == "__main__":
    # Small shapes consistent with the module.
    B, A, H = 2, 4, 32          # batch, num_agents, hidden_dim
    n, m = 16, 16               # reconstruction target dims
    r = min(n // 2, m // 2)     # maxrank = 8

    key = jax.random.PRNGKey(0)
    k_h, k_u, k_v, k_h2 = jax.random.split(key, 4)

    # Deterministic synthetic Linear weights (PyTorch layout: (out, in)).
    bound = 1.0 / (H ** 0.5)
    w_u = jax.random.uniform(k_u, (n * r, H), minval=-bound, maxval=bound,
                             dtype=jnp.float32)
    w_v = jax.random.uniform(k_v, (m * r, H), minval=-bound, maxval=bound,
                             dtype=jnp.float32)

    # One-time weight prep (hoisted out of the per-call path).
    wu_big, wv2, wv_big = prepare_recon_weights(w_u, w_v, n=n, m=m, r=r)

    # Case 1: the module's nominal small shape (single grid step).
    h = jax.random.normal(k_h, (B, A, H), dtype=jnp.float32)
    out = jax.block_until_ready(
        recon_decoder_pallas(h, wu_big, wv2, wv_big, n=n, m=m, r=r))
    ref_bf16 = recon_decoder_ref(h, w_u, w_v, n=n, m=m, r=r, cast_bf16=True)
    ref_f32 = recon_decoder_ref(h, w_u, w_v, n=n, m=m, r=r)
    assert out.shape == (B, A, n * m)
    assert jnp.allclose(out, ref_bf16, atol=2e-4, rtol=2e-3), \
        "mismatch vs bf16-rounded reference (small)"
    assert jnp.allclose(out, ref_f32, atol=2e-2, rtol=2e-2), \
        "mismatch vs f32 reference (small)"

    # Case 2: multi-tile path (BA=600 -> two balanced 304-row tiles, grid=2).
    B2, A2 = 2, 300
    h2 = jax.random.normal(k_h2, (B2, A2, H), dtype=jnp.float32)
    out2 = jax.block_until_ready(
        recon_decoder_pallas(h2, wu_big, wv2, wv_big, n=n, m=m, r=r))
    ref2 = recon_decoder_ref(h2, w_u, w_v, n=n, m=m, r=r, cast_bf16=True)
    assert out2.shape == (B2, A2, n * m)
    assert jnp.allclose(out2, ref2, atol=2e-4, rtol=2e-3), \
        "mismatch vs reference (tiled)"

    # Case 3: bf16 output path (halves HBM write traffic; biggest win on v5e).
    out_bf16 = jax.block_until_ready(
        recon_decoder_pallas(h2, wu_big, wv2, wv_big, n=n, m=m, r=r,
                             out_dtype=jnp.bfloat16))
    assert out_bf16.dtype == jnp.bfloat16
    assert jnp.allclose(out_bf16.astype(jnp.float32), ref2, atol=3e-2, rtol=3e-2), \
        "mismatch vs reference (bf16 output)"

    print("KERNEL_OK")
</pallas_src>

<mosaic_0001>
module attributes {stable_mosaic.version = 11 : i64} {
  func.func @_recon_kernel_tiled_v(%arg0: i32, %arg1: memref<16x32xf32, #tpu.memory_space<vmem>>, %arg2: memref<32x2048xbf16, #tpu.memory_space<vmem>>, %arg3: memref<32x128xbf16, #tpu.memory_space<vmem>>, %arg4: memref<16x256xf32, #tpu.memory_space<vmem>>) attributes {dimension_semantics = [#tpu.dimension_semantics<parallel>], iteration_bounds = array<i64: 1>, scalar_prefetch = 0 : i64, scratch_operands = 0 : i64, tpu.core_type = #tpu.core_type<tc>, window_params = [{transform_indices = @transform_0, window_bounds = array<i64: 16, 32>}, {pipeline_mode = #tpu.pipeline_mode<synchronous>, transform_indices = @transform_1, window_bounds = array<i64: 32, 2048>}, {pipeline_mode = #tpu.pipeline_mode<synchronous>, transform_indices = @transform_2, window_bounds = array<i64: 32, 128>}, {transform_indices = @transform_3, window_bounds = array<i64: 16, 256>}]} {
    %c0 = arith.constant 0 : index
    %c0_0 = arith.constant 0 : index
    %0 = vector.load %arg1[%c0, %c0_0] : memref<16x32xf32, #tpu.memory_space<vmem>>, vector<16x32xf32>
    %1 = arith.truncf %0 : vector<16x32xf32> to vector<16x32xbf16>
    %c0_1 = arith.constant 0 : index
    %c0_2 = arith.constant 0 : index
    %2 = vector.load %arg2[%c0_1, %c0_2] : memref<32x2048xbf16, #tpu.memory_space<vmem>>, vector<32x2048xbf16>
    %cst = arith.constant dense<0.000000e+00> : vector<16x2048xf32>
    %3 = tpu.matmul %1, %2, %cst {dimension_numbers = #tpu.dot_dimension_numbers<[1], [0], [0], [1], [0, 0, 1, 1], [], []>} : vector<16x32xbf16>, vector<32x2048xbf16>, vector<16x2048xf32> -> vector<16x2048xf32>
    %c0_3 = arith.constant 0 : index
    %c0_4 = arith.constant 0 : index
    %4 = vector.load %arg3[%c0_3, %c0_4] : memref<32x128xbf16, #tpu.memory_space<vmem>>, vector<32x128xbf16>
    %cst_5 = arith.constant dense<0.000000e+00> : vector<16x128xf32>
    %5 = tpu.matmul %1, %4, %cst_5 {dimension_numbers = #tpu.dot_dimension_numbers<[1], [0], [0], [1], [0, 0, 1, 1], [], []>} : vector<16x32xbf16>, vector<32x128xbf16>, vector<16x128xf32> -> vector<16x128xf32>
    %6 = vector.extract_strided_slice %3 {offsets = [0, 0], sizes = [16, 256], strides = [1, 1]} : vector<16x2048xf32> to vector<16x256xf32>
    %7 = vector.extract_strided_slice %5 {offsets = [0, 0], sizes = [16, 16], strides = [1, 1]} : vector<16x128xf32> to vector<16x16xf32>
    %8 = tpu.concatenate %7, %7, %7, %7, %7, %7, %7, %7, %7, %7, %7, %7, %7, %7, %7, %7 in 1 : vector<16x16xf32>, vector<16x16xf32>, vector<16x16xf32>, vector<16x16xf32>, vector<16x16xf32>, vector<16x16xf32>, vector<16x16xf32>, vector<16x16xf32>, vector<16x16xf32>, vector<16x16xf32>, vector<16x16xf32>, vector<16x16xf32>, vector<16x16xf32>, vector<16x16xf32>, vector<16x16xf32>, vector<16x16xf32> -> vector<16x256xf32>
    %9 = arith.mulf %6, %8 : vector<16x256xf32>
    %10 = vector.extract_strided_slice %3 {offsets = [0, 256], sizes = [16, 256], strides = [1, 1]} : vector<16x2048xf32> to vector<16x256xf32>
    %11 = vector.extract_strided_slice %5 {offsets = [0, 16], sizes = [16, 16], strides = [1, 1]} : vector<16x128xf32> to vector<16x16xf32>
    %12 = tpu.concatenate %11, %11, %11, %11, %11, %11, %11, %11, %11, %11, %11, %11, %11, %11, %11, %11 in 1 : vector<16x16xf32>, vector<16x16xf32>, vector<16x16xf32>, vector<16x16xf32>, vector<16x16xf32>, vector<16x16xf32>, vector<16x16xf32>, vector<16x16xf32>, vector<16x16xf32>, vector<16x16xf32>, vector<16x16xf32>, vector<16x16xf32>, vector<16x16xf32>, vector<16x16xf32>, vector<16x16xf32>, vector<16x16xf32> -> vector<16x256xf32>
    %13 = arith.mulf %10, %12 : vector<16x256xf32>
    %14 = arith.addf %9, %13 : vector<16x256xf32>
    %15 = vector.extract_strided_slice %3 {offsets = [0, 512], sizes = [16, 256], strides = [1, 1]} : vector<16x2048xf32> to vector<16x256xf32>
    %16 = vector.extract_strided_slice %5 {offsets = [0, 32], sizes = [16, 16], strides = [1, 1]} : vector<16x128xf32> to vector<16x16xf32>
    %17 = tpu.concatenate %16, %16, %16, %16, %16, %16, %16, %16, %16, %16, %16, %16, %16, %16, %16, %16 in 1 : vector<16x16xf32>, vector<16x16xf32>, vector<16x16xf32>, vector<16x16xf32>, vector<16x16xf32>, vector<16x16xf32>, vector<16x16xf32>, vector<16x16xf32>, vector<16x16xf32>, vector<16x16xf32>, vector<16x16xf32>, vector<16x16xf32>, vector<16x16xf32>, vector<16x16xf32>, vector<16x16xf32>, vector<16x16xf32> -> vector<16x256xf32>
    %18 = arith.mulf %15, %17 : vector<16x256xf32>
    %19 = arith.addf %14, %18 : vector<16x256xf32>
    %20 = vector.extract_strided_slice %3 {offsets = [0, 768], sizes = [16, 256], strides = [1, 1]} : vector<16x2048xf32> to vector<16x256xf32>
    %21 = vector.extract_strided_slice %5 {offsets = [0, 48], sizes = [16, 16], strides = [1, 1]} : vector<16x128xf32> to vector<16x16xf32>
    %22 = tpu.concatenate %21, %21, %21, %21, %21, %21, %21, %21, %21, %21, %21, %21, %21, %21, %21, %21 in 1 : vector<16x16xf32>, vector<16x16xf32>, vector<16x16xf32>, vector<16x16xf32>, vector<16x16xf32>, vector<16x16xf32>, vector<16x16xf32>, vector<16x16xf32>, vector<16x16xf32>, vector<16x16xf32>, vector<16x16xf32>, vector<16x16xf32>, vector<16x16xf32>, vector<16x16xf32>, vector<16x16xf32>, vector<16x16xf32> -> vector<16x256xf32>
    %23 = arith.mulf %20, %22 : vector<16x256xf32>
    %24 = arith.addf %19, %23 : vector<16x256xf32>
    %25 = vector.extract_strided_slice %3 {offsets = [0, 1024], sizes = [16, 256], strides = [1, 1]} : vector<16x2048xf32> to vector<16x256xf32>
    %26 = vector.extract_strided_slice %5 {offsets = [0, 64], sizes = [16, 16], strides = [1, 1]} : vector<16x128xf32> to vector<16x16xf32>
    %27 = tpu.concatenate %26, %26, %26, %26, %26, %26, %26, %26, %26, %26, %26, %26, %26, %26, %26, %26 in 1 : vector<16x16xf32>, vector<16x16xf32>, vector<16x16xf32>, vector<16x16xf32>, vector<16x16xf32>, vector<16x16xf32>, vector<16x16xf32>, vector<16x16xf32>, vector<16x16xf32>, vector<16x16xf32>, vector<16x16xf32>, vector<16x16xf32>, vector<16x16xf32>, vector<16x16xf32>, vector<16x16xf32>, vector<16x16xf32> -> vector<16x256xf32>
    %28 = arith.mulf %25, %27 : vector<16x256xf32>
    %29 = arith.addf %24, %28 : vector<16x256xf32>
    %30 = vector.extract_strided_slice %3 {offsets = [0, 1280], sizes = [16, 256], strides = [1, 1]} : vector<16x2048xf32> to vector<16x256xf32>
    %31 = vector.extract_strided_slice %5 {offsets = [0, 80], sizes = [16, 16], strides = [1, 1]} : vector<16x128xf32> to vector<16x16xf32>
    %32 = tpu.concatenate %31, %31, %31, %31, %31, %31, %31, %31, %31, %31, %31, %31, %31, %31, %31, %31 in 1 : vector<16x16xf32>, vector<16x16xf32>, vector<16x16xf32>, vector<16x16xf32>, vector<16x16xf32>, vector<16x16xf32>, vector<16x16xf32>, vector<16x16xf32>, vector<16x16xf32>, vector<16x16xf32>, vector<16x16xf32>, vector<16x16xf32>, vector<16x16xf32>, vector<16x16xf32>, vector<16x16xf32>, vector<16x16xf32> -> vector<16x256xf32>
    %33 = arith.mulf %30, %32 : vector<16x256xf32>
    %34 = arith.addf %29, %33 : vector<16x256xf32>
    %35 = vector.extract_strided_slice %3 {offsets = [0, 1536], sizes = [16, 256], strides = [1, 1]} : vector<16x2048xf32> to vector<16x256xf32>
    %36 = vector.extract_strided_slice %5 {offsets = [0, 96], sizes = [16, 16], strides = [1, 1]} : vector<16x128xf32> to vector<16x16xf32>
    %37 = tpu.concatenate %36, %36, %36, %36, %36, %36, %36, %36, %36, %36, %36, %36, %36, %36, %36, %36 in 1 : vector<16x16xf32>, vector<16x16xf32>, vector<16x16xf32>, vector<16x16xf32>, vector<16x16xf32>, vector<16x16xf32>, vector<16x16xf32>, vector<16x16xf32>, vector<16x16xf32>, vector<16x16xf32>, vector<16x16xf32>, vector<16x16xf32>, vector<16x16xf32>, vector<16x16xf32>, vector<16x16xf32>, vector<16x16xf32> -> vector<16x256xf32>
    %38 = arith.mulf %35, %37 : vector<16x256xf32>
    %39 = arith.addf %34, %38 : vector<16x256xf32>
    %40 = vector.extract_strided_slice %3 {offsets = [0, 1792], sizes = [16, 256], strides = [1, 1]} : vector<16x2048xf32> to vector<16x256xf32>
    %41 = vector.extract_strided_slice %5 {offsets = [0, 112], sizes = [16, 16], strides = [1, 1]} : vector<16x128xf32> to vector<16x16xf32>
    %42 = tpu.concatenate %41, %41, %41, %41, %41, %41, %41, %41, %41, %41, %41, %41, %41, %41, %41, %41 in 1 : vector<16x16xf32>, vector<16x16xf32>, vector<16x16xf32>, vector<16x16xf32>, vector<16x16xf32>, vector<16x16xf32>, vector<16x16xf32>, vector<16x16xf32>, vector<16x16xf32>, vector<16x16xf32>, vector<16x16xf32>, vector<16x16xf32>, vector<16x16xf32>, vector<16x16xf32>, vector<16x16xf32>, vector<16x16xf32> -> vector<16x256xf32>
    %43 = arith.mulf %40, %42 : vector<16x256xf32>
    %44 = arith.addf %39, %43 : vector<16x256xf32>
    %c0_6 = arith.constant 0 : index
    %c0_7 = arith.constant 0 : index
    %45 = vector.load %arg4[%c0_6, %c0_7] : memref<16x256xf32, #tpu.memory_space<vmem>>, vector<16x256xf32>
    tpu.vector_store %arg4[%c0_6, %c0_7], %44 {strides = array<i32>} : memref<16x256xf32, #tpu.memory_space<vmem>>, vector<16x256xf32>,
    return
  }
  func.func @transform_0(%arg0: i32) -> (i32, i32) {
    %c0_i32 = arith.constant 0 : i32
    %c0_i32_0 = arith.constant 0 : i32
    return %arg0, %c0_i32 : i32, i32
  }
  func.func @transform_1(%arg0: i32) -> (i32, i32) {
    %c0_i32 = arith.constant 0 : i32
    %c0_i32_0 = arith.constant 0 : i32
    %c0_i32_1 = arith.constant 0 : i32
    return %c0_i32, %c0_i32_0 : i32, i32
  }
  func.func @transform_2(%arg0: i32) -> (i32, i32) {
    %c0_i32 = arith.constant 0 : i32
    %c0_i32_0 = arith.constant 0 : i32
    %c0_i32_1 = arith.constant 0 : i32
    return %c0_i32, %c0_i32_0 : i32, i32
  }
  func.func @transform_3(%arg0: i32) -> (i32, i32) {
    %c0_i32 = arith.constant 0 : i32
    %c0_i32_0 = arith.constant 0 : i32
    return %arg0, %c0_i32 : i32, i32
  }
}

module attributes {stable_mosaic.version = 11 : i64} {
  func.func @_recon_kernel_expanded_v(%arg0: i32, %arg1: memref<16x32xf32, #tpu.memory_space<vmem>>, %arg2: memref<32x2048xbf16, #tpu.memory_space<vmem>>, %arg3: memref<32x2048xbf16, #tpu.memory_space<vmem>>, %arg4: memref<16x256xf32, #tpu.memory_space<vmem>>) attributes {dimension_semantics = [#tpu.dimension_semantics<parallel>], iteration_bounds = array<i64: 1>, scalar_prefetch = 0 : i64, scratch_operands = 0 : i64, tpu.core_type = #tpu.core_type<tc>, window_params = [{transform_indices = @transform_0, window_bounds = array<i64: 16, 32>}, {pipeline_mode = #tpu.pipeline_mode<synchronous>, transform_indices = @transform_1, window_bounds = array<i64: 32, 2048>}, {pipeline_mode = #tpu.pipeline_mode<synchronous>, transform_indices = @transform_2, window_bounds = array<i64: 32, 2048>}, {transform_indices = @transform_3, window_bounds = array<i64: 16, 256>}]} {
    %c0 = arith.constant 0 : index
    %c0_0 = arith.constant 0 : index
    %0 = vector.load %arg1[%c0, %c0_0] : memref<16x32xf32, #tpu.memory_space<vmem>>, vector<16x32xf32>
    %1 = arith.truncf %0 : vector<16x32xf32> to vector<16x32xbf16>
    %c0_1 = arith.constant 0 : index
    %c0_2 = arith.constant 0 : index
    %2 = vector.load %arg2[%c0_1, %c0_2] : memref<32x2048xbf16, #tpu.memory_space<vmem>>, vector<32x2048xbf16>
    %cst = arith.constant dense<0.000000e+00> : vector<16x2048xf32>
    %3 = tpu.matmul %1, %2, %cst {dimension_numbers = #tpu.dot_dimension_numbers<[1], [0], [0], [1], [0, 0, 1, 1], [], []>} : vector<16x32xbf16>, vector<32x2048xbf16>, vector<16x2048xf32> -> vector<16x2048xf32>
    %c0_3 = arith.constant 0 : index
    %c0_4 = arith.constant 0 : index
    %4 = vector.load %arg3[%c0_3, %c0_4] : memref<32x2048xbf16, #tpu.memory_space<vmem>>, vector<32x2048xbf16>
    %cst_5 = arith.constant dense<0.000000e+00> : vector<16x2048xf32>
    %5 = tpu.matmul %1, %4, %cst_5 {dimension_numbers = #tpu.dot_dimension_numbers<[1], [0], [0], [1], [0, 0, 1, 1], [], []>} : vector<16x32xbf16>, vector<32x2048xbf16>, vector<16x2048xf32> -> vector<16x2048xf32>
    %6 = vector.extract_strided_slice %3 {offsets = [0, 0], sizes = [16, 256], strides = [1, 1]} : vector<16x2048xf32> to vector<16x256xf32>
    %7 = vector.extract_strided_slice %5 {offsets = [0, 0], sizes = [16, 256], strides = [1, 1]} : vector<16x2048xf32> to vector<16x256xf32>
    %8 = arith.mulf %6, %7 : vector<16x256xf32>
    %9 = vector.extract_strided_slice %3 {offsets = [0, 256], sizes = [16, 256], strides = [1, 1]} : vector<16x2048xf32> to vector<16x256xf32>
    %10 = vector.extract_strided_slice %5 {offsets = [0, 256], sizes = [16, 256], strides = [1, 1]} : vector<16x2048xf32> to vector<16x256xf32>
    %11 = arith.mulf %9, %10 : vector<16x256xf32>
    %12 = arith.addf %8, %11 : vector<16x256xf32>
    %13 = vector.extract_strided_slice %3 {offsets = [0, 512], sizes = [16, 256], strides = [1, 1]} : vector<16x2048xf32> to vector<16x256xf32>
    %14 = vector.extract_strided_slice %5 {offsets = [0, 512], sizes = [16, 256], strides = [1, 1]} : vector<16x2048xf32> to vector<16x256xf32>
    %15 = arith.mulf %13, %14 : vector<16x256xf32>
    %16 = arith.addf %12, %15 : vector<16x256xf32>
    %17 = vector.extract_strided_slice %3 {offsets = [0, 768], sizes = [16, 256], strides = [1, 1]} : vector<16x2048xf32> to vector<16x256xf32>
    %18 = vector.extract_strided_slice %5 {offsets = [0, 768], sizes = [16, 256], strides = [1, 1]} : vector<16x2048xf32> to vector<16x256xf32>
    %19 = arith.mulf %17, %18 : vector<16x256xf32>
    %20 = arith.addf %16, %19 : vector<16x256xf32>
    %21 = vector.extract_strided_slice %3 {offsets = [0, 1024], sizes = [16, 256], strides = [1, 1]} : vector<16x2048xf32> to vector<16x256xf32>
    %22 = vector.extract_strided_slice %5 {offsets = [0, 1024], sizes = [16, 256], strides = [1, 1]} : vector<16x2048xf32> to vector<16x256xf32>
    %23 = arith.mulf %21, %22 : vector<16x256xf32>
    %24 = arith.addf %20, %23 : vector<16x256xf32>
    %25 = vector.extract_strided_slice %3 {offsets = [0, 1280], sizes = [16, 256], strides = [1, 1]} : vector<16x2048xf32> to vector<16x256xf32>
    %26 = vector.extract_strided_slice %5 {offsets = [0, 1280], sizes = [16, 256], strides = [1, 1]} : vector<16x2048xf32> to vector<16x256xf32>
    %27 = arith.mulf %25, %26 : vector<16x256xf32>
    %28 = arith.addf %24, %27 : vector<16x256xf32>
    %29 = vector.extract_strided_slice %3 {offsets = [0, 1536], sizes = [16, 256], strides = [1, 1]} : vector<16x2048xf32> to vector<16x256xf32>
    %30 = vector.extract_strided_slice %5 {offsets = [0, 1536], sizes = [16, 256], strides = [1, 1]} : vector<16x2048xf32> to vector<16x256xf32>
    %31 = arith.mulf %29, %30 : vector<16x256xf32>
    %32 = arith.addf %28, %31 : vector<16x256xf32>
    %33 = vector.extract_strided_slice %3 {offsets = [0, 1792], sizes = [16, 256], strides = [1, 1]} : vector<16x2048xf32> to vector<16x256xf32>
    %34 = vector.extract_strided_slice %5 {offsets = [0, 1792], sizes = [16, 256], strides = [1, 1]} : vector<16x2048xf32> to vector<16x256xf32>
    %35 = arith.mulf %33, %34 : vector<16x256xf32>
    %36 = arith.addf %32, %35 : vector<16x256xf32>
    %c0_6 = arith.constant 0 : index
    %c0_7 = arith.constant 0 : index
    %37 = vector.load %arg4[%c0_6, %c0_7] : memref<16x256xf32, #tpu.memory_space<vmem>>, vector<16x256xf32>
    tpu.vector_store %arg4[%c0_6, %c0_7], %36 {strides = array<i32>} : memref<16x256xf32, #tpu.memory_space<vmem>>, vector<16x256xf32>,
    return
  }
  func.func @transform_0(%arg0: i32) -> (i32, i32) {
    %c0_i32 = arith.constant 0 : i32
    %c0_i32_0 = arith.constant 0 : i32
    return %arg0, %c0_i32 : i32, i32
  }
  func.func @transform_1(%arg0: i32) -> (i32, i32) {
    %c0_i32 = arith.constant 0 : i32
    %c0_i32_0 = arith.constant 0 : i32
    %c0_i32_1 = arith.constant 0 : i32
    return %c0_i32, %c0_i32_0 : i32, i32
  }
  func.func @transform_2(%arg0: i32) -> (i32, i32) {
    %c0_i32 = arith.constant 0 : i32
    %c0_i32_0 = arith.constant 0 : i32
    %c0_i32_1 = arith.constant 0 : i32
    return %c0_i32, %c0_i32_0 : i32, i32
  }
  func.func @transform_3(%arg0: i32) -> (i32, i32) {
    %c0_i32 = arith.constant 0 : i32
    %c0_i32_0 = arith.constant 0 : i32
    return %arg0, %c0_i32 : i32, i32
  }
}

</mosaic_0001>

<bundles_post_ra>
// kernel: _recon_forward.1
= control target key start
LH: loop header
LB: loop body
LE: loop exit
PB: predicated region body
PF: predicated region fallthrough
CT: control target
= control target key end

     0   :  { %8 = vsyncpa [#allocation3], 0  ;;  %s952_s12 = smov [#allocation2]   ;;  %s1450_s0 = inlined_call_operand.vmem [shape: f32[16,32], index: 0, kind: input, shape index: {}]   ;;  %s1451_s1 = inlined_call_operand.hbm [shape: bf16[32,2048], index: 1, kind: input, shape index: {}]   ;;  %s1452_s2 = inlined_call_operand.vmem [shape: bf16[32,128], index: 2, kind: input, shape index: {}]   ;;  %s1453_s3 = inlined_call_operand.vmem [shape: f32[16,256], index: 3, kind: output, shape index: {}]  }
   0x1   :  { %s16_s13 = sshll.u32 %s952_s12, 4  ;;  %s928_s16 = scalar_lea.hbm %s1451_s1, 4096  ;;  %s17_s13 = int_to_ptr.vmem [resolvable:$true] %s16_s13 }
   0x2   :  { %p929_p0 = scmp.ne.s32.totalorder %s1451_s1, %s928_s16  ;;  %p932_p1 = scmp.lt.u32.totalorder %s928_s16, %s1451_s1 }
   0x4   :  { %p934_p2 = pnand %p932_p1, %p929_p0 }
   0x6   :  { %937 = shalt.err (!%p934_p2)
}
   0x7   :  { %s938_s21 = scalar_lea.vmem %s17_s13, 4096  ;;  %p943_p4 = scmp.lt.s32.totalorder %s17_s13, %s17_s13 }
   0x8   :  { %p939_p3 = scmp.ne.s32.totalorder %s17_s13, %s938_s21  ;;  %p944_p5 = scmp.lt.s32.totalorder %s938_s21, %s938_s21 }
   0xa   :  { %p945_p6 = por %p944_p5, %p943_p4 }
   0xc   :  { %p946_p7 = pnand %p945_p6, %p939_p3 }
   0xe   :  { %949 = shalt.err (!%p946_p7)
}
   0xf   :  { %s953_s22 = smov 1024   ;;  %s954_s23 = smov 64  }
  0x10   :  { %22 = dma.hbm_to_vmem [thread:$0]  %s1451_s1, 4096, %s17_s13, [#allocation3], %s953_s22, %s953_s22, %s954_s23  }
  0x11   :  { %950 = dma.done.wait [#allocation3], 4096  }
  0x12   :  { %951 = vsyncadd [#allocation3], 4294963200  ;;  %v955_v0 = vmov 0   ;;  %v32_v1 = vld [vmem:[#allocation2] sm:$0xff]  ;;  %v34_v8 = vld [vmem:[#allocation2 + $0x10] sm:$0xff]  ;;  %vm224_vm0 = vcmask 261120  }
  0x13   :  { %260 = vmatprep.mubr.bf16.mxu0 %v955_v0  ;;  %303 = vmatprep.mubr.bf16.mxu1 %v955_v0  ;;  %v40_v2 = vld [vmem:[#allocation2 + $0x40] sm:$0xff]  ;;  %v42_v9 = vld [vmem:[#allocation2 + $0x50] sm:$0xff]  ;;  %v30_v12 = vld [vmem:[%s1450_s0 + $0x8] sm:$0xff]  ;;  %vm957_vm1 = vmmov 0   ;;  %s959_s5 = smov 16   ;;  %s960_s6 = smov 32  }
  0x14   :  { %v48_v3 = vld [vmem:[#allocation2 + $0x80] sm:$0xff]  ;;  %v861_v4 = vcombine.high %v32_v1, %v40_v2  ;;  %v860_v5 = vcombine.low %v32_v1, %v40_v2  ;;  %v865_v13 = vcombine.high %v34_v8, %v42_v9  ;;  %v50_v14 = vld [vmem:[#allocation2 + $0x90] sm:$0xff]  ;;  %v864_v17 = vcombine.low %v34_v8, %v42_v9  ;;  %v33_v18 = vld [vmem:[#allocation2 + $0x8] sm:$0xff]  ;;  %s961_s7 = smov 48   ;;  %s962_s8 = smov 96  }
  0x15   :  { %v56_v6 = vld [vmem:[#allocation2 + $0xc0] sm:$0xff]  ;;  %v58_v15 = vld [vmem:[#allocation2 + $0xd0] sm:$0xff]  ;;  %v41_v19 = vld [vmem:[#allocation2 + $0x48] sm:$0xff]  ;;  %s963_s9 = smov 80   ;;  %vm673_vm2 = vcmask 130048   ;;  %vm678_vm3 = vcmask 392192  }
  0x16   :  { %v877_v7 = vcombine.high %v48_v3, %v56_v6  ;;  %228 = vmatprep.subr.bf16.mxu0 %v861_v4  ;;  %v876_v10 = vcombine.low %v48_v3, %v56_v6  ;;  %v29_v11 = vld [vmem:[%s1450_s0] sm:$0xff]  ;;  %v49_v20 = vld [vmem:[#allocation2 + $0x88] sm:$0xff]  ;;  %v881_v21 = vcombine.high %v50_v14, %v58_v15  ;;  %v863_v22 = vcombine.high %v33_v18, %v41_v19  ;;  %v35_v28 = vld [vmem:[#allocation2 + $0x18] sm:$0xff] }
  0x17   :  { %229 = vmatpush1.bf16.msra.mxu0 %v860_v5  ;;  %v1005_v16 = vpack.c.bf16 %v30_v12, %v29_v11  ;;  %v862_v23 = vcombine.low %v33_v18, %v41_v19  ;;  %v57_v24 = vld [vmem:[#allocation2 + $0xc8] sm:$0xff]  ;;  %v36_v25 = vld [vmem:[#allocation2 + $0x20] sm:$0xff]  ;;  %v43_v29 = vld [vmem:[#allocation2 + $0x58] sm:$0xff]  ;;  %v880_v30 = vcombine.low %v50_v14, %v58_v15  ;;  %v956_v3 = vmov 0.0  }
  0x18   :  { %230 = vmatprep.subr.bf16.mxu0 %v877_v7  ;;  %v44_v26 = vld [vmem:[#allocation2 + $0x60] sm:$0xff]  ;;  %v879_v27 = vcombine.high %v49_v20, %v57_v24  ;;  %271 = vmatprep.subr.bf16.mxu1 %v863_v22  ;;  %v878_v32 = vcombine.low %v49_v20, %v57_v24  ;;  %v867_v35 = vcombine.high %v35_v28, %v43_v29  ;;  %v51_v37 = vld [vmem:[#allocation2 + $0x98] sm:$0xff]  ;;  %v38_v40 = vld [vmem:[#allocation2 + $0x30] sm:$0xff]  ;;  %vm681_vm4 = vcmask 523264  }
  0x19   :  { %v869_v31 = vcombine.high %v36_v25, %v44_v26  ;;  %272 = vmatpush1.bf16.msra.mxu1 %v862_v23  ;;  %v52_v33 = vld [vmem:[#allocation2 + $0xa0] sm:$0xff]  ;;  %v868_v36 = vcombine.low %v36_v25, %v44_v26  ;;  %v59_v38 = vld [vmem:[#allocation2 + $0xd8] sm:$0xff]  ;;  %v46_v41 = vld [vmem:[#allocation2 + $0x70] sm:$0xff]  ;;  %v866_v42 = vcombine.low %v35_v28, %v43_v29  ;;  %vm684_vm5 = vcmask 654336  }
  0x1a   :  { %v60_v34 = vld [vmem:[#allocation2 + $0xe0] sm:$0xff]  ;;  %273 = vmatprep.subr.bf16.mxu1 %v879_v27  ;;  %v883_v43 = vcombine.high %v51_v37, %v59_v38  ;;  %v37_v45 = vld [vmem:[#allocation2 + $0x28] sm:$0xff]  ;;  %v873_v47 = vcombine.high %v38_v40, %v46_v41  ;;  %v54_v48 = vld [vmem:[#allocation2 + $0xb0] sm:$0xff]  ;;  %v882_v50 = vcombine.low %v51_v37, %v59_v38  ;;  %v872_v52 = vcombine.low %v38_v40, %v46_v41 }
  0x1b   :  { %231 = vmatpush1.bf16.msra.mxu0 %v876_v10  ;;  %v885_v39 = vcombine.high %v52_v33, %v60_v34  ;;  %v884_v44 = vcombine.low %v52_v33, %v60_v34  ;;  %v45_v46 = vld [vmem:[#allocation2 + $0x68] sm:$0xff]  ;;  %v62_v49 = vld [vmem:[#allocation2 + $0xf0] sm:$0xff]  ;;  %v39_v59 = vld [vmem:[#allocation2 + $0x38] sm:$0xff]  ;;  %vm687_vm6 = vcmask 785408   ;;  %vm690_vm7 = vcmask 916480  }
  0x1c   :  { %314 = vmatprep.subr.bf16.mxu0 %v865_v13  ;;  %v871_v51 = vcombine.high %v37_v45, %v45_v46  ;;  %v53_v53 = vld [vmem:[#allocation2 + $0xa8] sm:$0xff]  ;;  %v889_v55 = vcombine.high %v54_v48, %v62_v49  ;;  %v870_v56 = vcombine.low %v37_v45, %v45_v46  ;;  %v888_v58 = vcombine.low %v54_v48, %v62_v49  ;;  %v47_v60 = vld [vmem:[#allocation2 + $0x78] sm:$0xff]  ;;  %v926_v63 = vld [vmem:[%s1452_s2] sm:$0xff]  }
  0x1d   :  { %274 = vmatpush1.bf16.msra.mxu1 %v878_v32  ;;  %v61_v54 = vld [vmem:[#allocation2 + $0xe8] sm:$0xff]  ;;  %v875_v62 = vcombine.high %v39_v59, %v47_v60  ;;  %v55_v1 = vld [vmem:[#allocation2 + $0xb8] sm:$0xff]  ;;  %v874_v4 = vcombine.low %v39_v59, %v47_v60 }
  0x1e   :  { %892 = vmatmul.mubr.msk.bf16.vlgmr.msra.gmra.mrb[0].mxu0 %vm224_vm0, %v1005_v16  ;;  %357 = vmatprep.subr.bf16.mxu1 %v867_v35  ;;  %v887_v57 = vcombine.high %v53_v53, %v61_v54  ;;  %v886_v61 = vcombine.low %v53_v53, %v61_v54  ;;  %v63_v2 = vld [vmem:[#allocation2 + $0xf8] sm:$0xff]  ;;  %v927_v6 = vld [vmem:[%s1452_s2 + $0x8] sm:$0xff]   ;;  %s958_s2 = smov 112  }
  0x1f   :  { %315 = vmatpush1.bf16.msra.mxu0 %v864_v17  ;;  %346 = vmatprep.mubr.bf16.mxu0 %v955_v0  ;;  %v891_v5 = vcombine.high %v55_v1, %v63_v2  ;;  %v890_v7 = vcombine.low %v55_v1, %v63_v2 }
  0x20   :  { %316 = vmatprep.subr.bf16.mxu0 %v881_v21  ;;  %893 = vmatmul.mubr.msk.bf16.vlgmr.msra.gmra.mrb[0].mxu1 %vm224_vm0, %v1005_v16 }
  0x21   :  { %358 = vmatpush1.bf16.msra.mxu1 %v866_v42  ;;  %389 = vmatprep.mubr.bf16.mxu1 %v955_v0 }
  0x22   :  { %359 = vmatprep.subr.bf16.mxu1 %v883_v43 }
  0x23   :  { %317 = vmatpush1.bf16.msra.mxu0 %v880_v30 }
  0x24   :  { %400 = vmatprep.subr.bf16.mxu0 %v869_v31 }
  0x25   :  { %360 = vmatpush1.bf16.msra.mxu1 %v882_v50 }
  0x26   :  { %894 = vmatmul.mubr.msk.bf16.vlgmr.msra.gmra.mrb[4].mxu0 %vm224_vm0, %v1005_v16  ;;  %443 = vmatprep.subr.bf16.mxu1 %v871_v51 }
  0x27   :  { %401 = vmatpush1.bf16.msra.mxu0 %v868_v36  ;;  %432 = vmatprep.mubr.bf16.mxu0 %v955_v0 }
  0x28   :  { %402 = vmatprep.subr.bf16.mxu0 %v885_v39  ;;  %895 = vmatmul.mubr.msk.bf16.vlgmr.msra.gmra.mrb[4].mxu1 %vm224_vm0, %v1005_v16 }
  0x29   :  { %444 = vmatpush1.bf16.msra.mxu1 %v870_v56  ;;  %475 = vmatprep.mubr.bf16.mxu1 %v955_v0 }
  0x2a   :  { %445 = vmatprep.subr.bf16.mxu1 %v887_v57 }
  0x2b   :  { %403 = vmatpush1.bf16.msra.mxu0 %v884_v44 }
  0x2c   :  { %486 = vmatprep.subr.bf16.mxu0 %v873_v47 }
  0x2d   :  { %446 = vmatpush1.bf16.msra.mxu1 %v886_v61 }
  0x2e   :  { %896 = vmatmul.mubr.msk.bf16.vlgmr.msra.gmra.mrb[8].mxu0 %vm224_vm0, %v1005_v16  ;;  %529 = vmatprep.subr.bf16.mxu1 %v875_v62 }
  0x2f   :  { %487 = vmatpush1.bf16.msra.mxu0 %v872_v52  ;;  %518 = vmatprep.mubr.bf16.mxu0 %v955_v0 }
  0x30   :  { %488 = vmatprep.subr.bf16.mxu0 %v889_v55  ;;  %897 = vmatmul.mubr.msk.bf16.vlgmr.msra.gmra.mrb[8].mxu1 %vm224_vm0, %v1005_v16 }
  0x31   :  { %530 = vmatpush1.bf16.msra.mxu1 %v874_v4  ;;  %561 = vmatprep.mubr.bf16.mxu1 %v955_v0 }
  0x32   :  { %531 = vmatprep.subr.bf16.mxu1 %v891_v5 }
  0x33   :  { %489 = vmatpush1.bf16.msra.mxu0 %v888_v58 }
  0x34   :  { %906 = vmatprep.subr.bf16.mxu0 %v956_v3 }
  0x35   :  { %532 = vmatpush1.bf16.msra.mxu1 %v890_v7 }
  0x36   :  { %898 = vmatmul.mubr.msk.bf16.vlgmr.msra.gmra.mrb[12].mxu0 %vm224_vm0, %v1005_v16 }
  0x37   :  { %907 = vmatpush3.bf16.msra.mxu0 %v926_v63  ;;  %910 = vmatprep.mubr.msk.bf16.mxu0 %vm957_vm1, %v956_v3 }
  0x38   :  { %908 = vmatprep.subr.bf16.mxu0 %v956_v3  ;;  %899 = vmatmul.mubr.msk.bf16.vlgmr.msra.gmra.mrb[12].mxu1 %vm224_vm0, %v1005_v16 }
  0x3b   :  { %909 = vmatpush3.bf16.msra.mxu0 %v927_v6 }
  0x3e   :  { %911 = vmatmul.mubr.msk.bf16.vlgmr.msra.gmra.mrb[16].mxu0 %vm224_vm0, %v1005_v16 }
  0xf1   :  { %v1037_v8 = vpop.f32.mrb[0].mxu0 }
  0xf2   :  { %v1039_v9 = vpop.f32.mrb[1].mxu0 }
  0xf3   :  { %v1041_v10 = vpop.f32.mrb[2].mxu0  ;;  %v1069_v23 = vpop.f32.mrb[0].mxu1 }
  0xf4   :  { %v1043_v11 = vpop.f32.mrb[3].mxu0  ;;  %v1071_v24 = vpop.f32.mrb[1].mxu1 }
  0xf5   :  { %v1073_v25 = vpop.f32.mrb[2].mxu1 }
  0xf6   :  { %v1075_v26 = vpop.f32.mrb[3].mxu1 }
  0xf7   :  { %1458 = vst [vmem:[#allocation9_spill] sm:$0xff] %v1075_v26 }
  0xf9   :  { %v1045_v12 = vpop.f32.mrb[4].mxu0 }
  0xfa   :  { %v1047_v0 = vpop.f32.mrb[5].mxu0 }
  0xfb   :  { %v1049_v13 = vpop.f32.mrb[6].mxu0  ;;  %v1083_v31 = vpop.f32.mrb[4].mxu1 }
  0xfc   :  { %v1051_v14 = vpop.f32.mrb[7].mxu0  ;;  %v1087_v32 = vpop.f32.mrb[5].mxu1 }
  0xfd   :  { %1454 = vst [vmem:[#allocation5_spill] sm:$0xff] %v1051_v14  ;;  %v1089_v33 = vpop.f32.mrb[6].mxu1 }
  0xfe   :  { %v1091_v34 = vpop.f32.mrb[7].mxu1 }
  0xff   :  { %1459 = vst [vmem:[#allocation10_spill] sm:$0xff] %v1091_v34 }
 0x101   :  { %v1053_v15 = vpop.f32.mrb[8].mxu0 }
 0x102   :  { %v1055_v17 = vpop.f32.mrb[9].mxu0 }
 0x103   :  { %v1057_v16 = vpop.f32.mrb[10].mxu0  ;;  %v1093_v35 = vpop.f32.mrb[8].mxu1 }
 0x104   :  { %v1059_v18 = vpop.f32.mrb[11].mxu0  ;;  %v1097_v36 = vpop.f32.mrb[9].mxu1 }
 0x105   :  { %1455 = vst [vmem:[#allocation6_spill] sm:$0xff] %v1059_v18  ;;  %v1099_v37 = vpop.f32.mrb[10].mxu1 }
 0x106   :  { %v1101_v38 = vpop.f32.mrb[11].mxu1 }
 0x107   :  { %1460 = vst [vmem:[#allocation11_spill] sm:$0xff] %v1101_v38 }
 0x109   :  { %v1061_v19 = vpop.f32.mrb[12].mxu0 }
 0x10a   :  { %v1063_v20 = vpop.f32.mrb[13].mxu0 }
 0x10b   :  { %v1065_v21 = vpop.f32.mrb[14].mxu0  ;;  %v1108_v39 = vpop.f32.mrb[12].mxu1 }
 0x10c   :  { %1456 = vst [vmem:[#allocation7_spill] sm:$0xff] %v1065_v21  ;;  %v1067_v22 = vpop.f32.mrb[15].mxu0  ;;  %v1115_v40 = vpop.f32.mrb[13].mxu1 }
 0x10d   :  { %1457 = vst [vmem:[#allocation8_spill] sm:$0xff] %v1067_v22  ;;  %v1117_v41 = vpop.f32.mrb[14].mxu1 }
 0x10e   :  { %1461 = vst [vmem:[#allocation12_spill] sm:$0xff] %v1117_v41  ;;  %v1119_v42 = vpop.f32.mrb[15].mxu1 }
 0x10f   :  { %1462 = vst [vmem:[#allocation13_spill] sm:$0xff] %v1119_v42 }
 0x111   :  { %v1077_v27 = vpop.f32.mrb[16].mxu0 }
 0x112   :  { %667 = vrot.lane.b32.xlu1 %v1077_v27, %s958_s2  ;;  %631 = vrot.lane.b32.xlu0 %v1077_v27, %s959_s5  ;;  %v912_v28 = vpop.f32.mrb[17].mxu0 }
 0x113   :  { %v1081_v29 = vpop.f32.mrb[18].mxu0 }
 0x114   :  { %v913_v30 = vpop.f32.mrb[19].mxu0 }
 0x116   :  { %637 = vrot.lane.b32.xlu0 %v1077_v27, %s960_s6  ;;  %669 = vrot.lane.b32.xlu1 %v1081_v29, %s958_s2 }
 0x11a   :  { %643 = vrot.lane.b32.xlu0 %v1077_v27, %s961_s7  ;;  %639 = vrot.lane.b32.xlu1 %v1081_v29, %s960_s6 }
 0x11e   :  { %661 = vrot.lane.b32.xlu0 %v1077_v27, %s962_s8  ;;  %645 = vrot.lane.b32.xlu1 %v1081_v29, %s961_s7 }
 0x122   :  { %649 = vrot.lane.b32.xlu0 %v1077_v27, %s954_s23  ;;  %663 = vrot.lane.b32.xlu1 %v1081_v29, %s962_s8 }
 0x126   :  { %651 = vrot.lane.b32.xlu1 %v1081_v29, %s954_s23  ;;  %633 = vrot.lane.b32.xlu0 %v1081_v29, %s959_s5 }
 0x12a   :  { %657 = vrot.lane.b32.xlu1 %v1081_v29, %s963_s9  ;;  %655 = vrot.lane.b32.xlu0 %v1077_v27, %s963_s9 }
 0x184   :  { %v1121_v43 = vpop.permute.xlu1 %667  ;;  %v1123_v44 = vpop.permute.xlu0 %631 }
 0x185   :  { %v697_v49 = vsel %vm673_vm2, %v1121_v43, %v1077_v27  ;;  %v674_v54 = vsel %vm673_vm2, %v1077_v27, %v1123_v44 }
 0x186   :  { %v699_v55 = vsel %vm224_vm0, %v697_v49, %v1123_v44 }
 0x188   :  { %v1125_v45 = vpop.permute.xlu0 %637  ;;  %v1127_v46 = vpop.permute.xlu1 %669 }
 0x189   :  { %v676_v57 = vsel %vm224_vm0, %v674_v54, %v1125_v45  ;;  %v701_v58 = vsel %vm678_vm3, %v699_v55, %v1125_v45  ;;  %v698_v62 = vsel %vm673_vm2, %v1127_v46, %v1081_v29  ;;  %v829_v2 = vsel %vm673_vm2, %v1123_v44, %v1125_v45 }
 0x18c   :  { %v1129_v47 = vpop.permute.xlu0 %643  ;;  %v1131_v48 = vpop.permute.xlu1 %639 }
 0x18d   :  { %v679_v63 = vsel %vm678_vm3, %v676_v57, %v1129_v47  ;;  %v703_v3 = vsel %vm681_vm4, %v701_v58, %v1129_v47  ;;  %v807_v4 = vsel %vm673_vm2, %v1125_v45, %v1129_v47  ;;  %v831_v6 = vsel %vm224_vm0, %v829_v2, %v1129_v47 }
 0x190   :  { %v1136_v50 = vpop.permute.xlu0 %661  ;;  %v1138_v51 = vpop.permute.xlu1 %645 }
 0x191   :  { %v719_v52 = vsel %vm673_vm2, %v1136_v50, %v1121_v43  ;;  %v808_v7 = vsel %vm673_vm2, %v1131_v48, %v1138_v51 }
 0x192   :  { %v721_v53 = vsel %vm224_vm0, %v719_v52, %v1077_v27 }
 0x193   :  { %v723_v56 = vsel %vm678_vm3, %v721_v53, %v1123_v44 }
 0x194   :  { %v1156_v59 = vpop.permute.xlu0 %649  ;;  %v1158_v60 = vpop.permute.xlu1 %663  ;;  %v725_v61 = vsel %vm681_vm4, %v723_v56, %v1125_v45 }
 0x195   :  { %v720_v1 = vsel %vm673_vm2, %v1158_v60, %v1127_v46  ;;  %v727_v5 = vsel %vm684_vm5, %v725_v61, %v1129_v47  ;;  %v682_v28 = vsel %vm681_vm4, %v679_v63, %v1156_v59  ;;  %v705_v30 = vsel %vm684_vm5, %v703_v3, %v1156_v59 }
 0x196   :  { %v785_v49 = vsel %vm673_vm2, %v1129_v47, %v1156_v59  ;;  %v722_v53 = vsel %vm224_vm0, %v720_v1, %v1081_v29  ;;  %v809_v55 = vsel %vm224_vm0, %v807_v4, %v1156_v59  ;;  %v729_v56 = vsel %vm687_vm6, %v727_v5, %v1156_v59 }
 0x197   :  { %v1204_v57 = vsel %vm678_vm3, %v831_v6, %v1156_v59 }
 0x198   :  { %v1192_v52 = vpop.permute.xlu1 %651  ;;  %v1196_v54 = vpop.permute.xlu0 %633 }
 0x199   :  { %v675_v58 = vsel %vm673_vm2, %v1081_v29, %v1196_v54  ;;  %v700_v61 = vsel %vm224_vm0, %v698_v62, %v1196_v54  ;;  %v724_v63 = vsel %vm678_vm3, %v722_v53, %v1196_v54  ;;  %v786_v1 = vsel %vm673_vm2, %v1138_v51, %v1192_v52 }
 0x19a   :  { %v677_v2 = vsel %vm224_vm0, %v675_v58, %v1131_v48  ;;  %v702_v3 = vsel %vm678_vm3, %v700_v61, %v1131_v48  ;;  %v726_v4 = vsel %vm681_vm4, %v724_v63, %v1131_v48  ;;  %v810_v5 = vsel %vm224_vm0, %v808_v7, %v1192_v52 }
 0x19b   :  { %v680_v62 = vsel %vm678_vm3, %v677_v2, %v1138_v51  ;;  %v704_v6 = vsel %vm681_vm4, %v702_v3, %v1138_v51  ;;  %v728_v53 = vsel %vm684_vm5, %v726_v4, %v1138_v51  ;;  %v830_v58 = vsel %vm673_vm2, %v1196_v54, %v1131_v48 }
 0x19c   :  { %v1233_v61 = vpop.permute.xlu1 %657  ;;  %v683_v63 = vsel %vm681_vm4, %v680_v62, %v1192_v52  ;;  %v706_v7 = vsel %vm684_vm5, %v704_v6, %v1192_v52  ;;  %v1241_v2 = vsel %vm687_vm6, %v728_v53, %v1192_v52  ;;  %v1245_v3 = vsel %vm224_vm0, %v830_v58, %v1138_v51  ;;  %v656_v53 = vpop.permute.xlu0 %655 }
 0x19d   :  { %v686_v4 = vsel %vm684_vm5, %v683_v63, %v1233_v61  ;;  %v1251_v42 = vsel %vm687_vm6, %v706_v7, %v1233_v61  ;;  %v742_v62 = vsel %vm673_vm2, %v1233_v61, %v1158_v60  ;;  %v764_v6 = vsel %vm673_vm2, %v1192_v52, %v1233_v61 }
 0x19e   :  { %v1261_v58 = vsel %vm687_vm6, %v686_v4, %v1158_v60  ;;  %v744_v63 = vsel %vm224_vm0, %v742_v62, %v1127_v46  ;;  %v766_v7 = vsel %vm224_vm0, %v764_v6, %v1158_v60  ;;  %v788_v22 = vsel %vm224_vm0, %v786_v1, %v1233_v61 }
 0x19f   :  { %v1271_v38 = vsel %vm678_vm3, %v744_v63, %v1081_v29  ;;  %v1275_v18 = vsel %vm678_vm3, %v766_v7, %v1127_v46  ;;  %v1279_v4 = vsel %vm678_vm3, %v788_v22, %v1158_v60  ;;  %v1283_v62 = vsel %vm678_vm3, %v810_v5, %v1233_v61 }
 0x1a0   :  { %v685_v6 = vsel %vm684_vm5, %v682_v28, %v656_v53  ;;  %v707_v1 = vsel %vm687_vm6, %v705_v30, %v656_v53  ;;  %v741_v63 = vsel %vm673_vm2, %v656_v53, %v1136_v50  ;;  %v763_v41 = vsel %vm673_vm2, %v1156_v59, %v656_v53 }
 0x1a1   :  { %v688_v7 = vsel %vm687_vm6, %v685_v6, %v1136_v50  ;;  %v743_v22 = vsel %vm224_vm0, %v741_v63, %v1121_v43  ;;  %v765_v5 = vsel %vm224_vm0, %v763_v41, %v1136_v50  ;;  %v787_v34 = vsel %vm224_vm0, %v785_v49, %v656_v53 }
 0x1a2   :  { %v745_v28 = vsel %vm678_vm3, %v743_v22, %v1077_v27  ;;  %v767_v30 = vsel %vm678_vm3, %v765_v5, %v1121_v43  ;;  %v789_v14 = vsel %vm678_vm3, %v787_v34, %v1136_v50  ;;  %v811_v26 = vsel %vm678_vm3, %v809_v55, %v656_v53 }
 0x1a3   :  { %v691_v6 = vsel %vm690_vm7, %v688_v7, %v1121_v43  ;;  %v709_v63 = vsel %vm690_vm7, %v707_v1, %v1136_v50  ;;  %v731_v41 = vsel %vm690_vm7, %v729_v56, %v656_v53  ;;  %v747_v49 = vsel %vm681_vm4, %v745_v28, %v1123_v44 }
 0x1a4   :  { %v693_v22 = vmul.f32 %v691_v6, %v1037_v8  ;;  %v711_v5 = vmul.f32 %v709_v63, %v1069_v23  ;;  %v733_v21 = vmul.f32 %v731_v41, %v1045_v12  ;;  %v749_v34 = vsel %vm684_vm5, %v747_v49, %v1125_v45 }
 0x1a5   :  { %v751_v55 = vsel %vm687_vm6, %v749_v34, %v1129_v47  ;;  %v769_v1 = vsel %vm681_vm4, %v767_v30, %v1077_v27  ;;  %v791_v56 = vsel %vm681_vm4, %v789_v14, %v1121_v43  ;;  %v813_v7 = vsel %vm681_vm4, %v811_v26, %v1136_v50 }
 0x1a6   :  { %v715_v8 = vadd.f32 %v711_v5, %v693_v22  ;;  %v753_v23 = vsel %vm690_vm7, %v751_v55, %v1156_v59  ;;  %v771_v12 = vsel %vm684_vm5, %v769_v1, %v1123_v44  ;;  %v793_v28 = vsel %vm684_vm5, %v791_v56, %v1077_v27 }
 0x1a7   :  { %v755_v49 = vmul.f32 %v753_v23, %v1083_v31  ;;  %v773_v30 = vsel %vm687_vm6, %v771_v12, %v1125_v45  ;;  %v795_v14 = vsel %vm687_vm6, %v793_v28, %v1123_v44  ;;  %v815_v26 = vsel %vm684_vm5, %v813_v7, %v1121_v43 }
 0x1a8   :  { %v737_v22 = vadd.f32 %v733_v21, %v715_v8  ;;  %v775_v59 = vsel %vm690_vm7, %v773_v30, %v1129_v47  ;;  %v797_v5 = vsel %vm690_vm7, %v795_v14, %v1125_v45  ;;  %v817_v34 = vsel %vm687_vm6, %v815_v26, %v1077_v27 }
 0x1a9   :  { %v777_v31 = vmul.f32 %v775_v59, %v1053_v15  ;;  %v799_v55 = vmul.f32 %v797_v5, %v1093_v35  ;;  %v819_v1 = vsel %vm690_vm7, %v817_v34, %v1123_v44  ;;  %v835_v56 = vsel %vm681_vm4, %v1204_v57, %v656_v53 }
 0x1aa   :  { %v759_v21 = vadd.f32 %v755_v49, %v737_v22  ;;  %v821_v7 = vmul.f32 %v819_v1, %v1061_v19  ;;  %v837_v47 = vsel %vm684_vm5, %v835_v56, %v1136_v50  ;;  %v694_v45 = vmul.f32 %v691_v6, %v1039_v9 }
 0x1ab   :  { %v839_v8 = vsel %vm687_vm6, %v837_v47, %v1121_v43  ;;  %v712_v15 = vmul.f32 %v709_v63, %v1071_v24  ;;  %v734_v35 = vmul.f32 %v731_v41, %v1047_v0  ;;  %v756_v44 = vmul.f32 %v753_v23, %v1087_v32  ;;  %v1464_v47 = vld [vmem:[#allocation9_spill] sm:$0xff] }
 0x1ac   :  { %v781_v12 = vadd.f32 %v777_v31, %v759_v21  ;;  %v841_v57 = vsel %vm690_vm7, %v839_v8, %v1077_v27  ;;  %v778_v19 = vmul.f32 %v775_v59, %v1055_v17  ;;  %v800_v53 = vmul.f32 %v797_v5, %v1097_v36 }
 0x1ad   :  { %v843_v50 = vmul.f32 %v841_v57, %v1108_v39  ;;  %v716_v9 = vadd.f32 %v712_v15, %v694_v45  ;;  %v822_v6 = vmul.f32 %v819_v1, %v1063_v20  ;;  %v844_v43 = vmul.f32 %v841_v57, %v1115_v40  ;;  %v1465_v15 = vld [vmem:[#allocation5_spill] sm:$0xff] }
 0x1ae   :  { %v803_v24 = vadd.f32 %v799_v55, %v781_v12  ;;  %v692_v0 = vsel %vm690_vm7, %v1261_v58, %v1127_v46  ;;  %v710_v27 = vsel %vm690_vm7, %v1251_v42, %v1158_v60  ;;  %v732_v17 = vsel %vm690_vm7, %v1241_v2, %v1233_v61 }
 0x1af   :  { %v738_v32 = vadd.f32 %v734_v35, %v716_v9  ;;  %v695_v36 = vmul.f32 %v692_v0, %v1041_v10  ;;  %v713_v20 = vmul.f32 %v710_v27, %v1073_v25  ;;  %v735_v39 = vmul.f32 %v732_v17, %v1049_v13  ;;  %v1470_v9 = vld [vmem:[#allocation8_spill] sm:$0xff] }
 0x1b0   :  { %v825_v40 = vadd.f32 %v821_v7, %v803_v24  ;;  %v748_v58 = vsel %vm681_vm4, %v1271_v38, %v1196_v54  ;;  %v770_v42 = vsel %vm681_vm4, %v1275_v18, %v1081_v29  ;;  %v792_v2 = vsel %vm681_vm4, %v1279_v4, %v1127_v46 }
 0x1b1   :  { %v760_v63 = vadd.f32 %v756_v44, %v738_v32  ;;  %v717_v41 = vadd.f32 %v713_v20, %v695_v36  ;;  %v750_v10 = vsel %vm684_vm5, %v748_v58, %v1131_v48  ;;  %v772_v13 = vsel %vm684_vm5, %v770_v42, %v1196_v54 }
 0x1b2   :  { %v847_v25 = vadd.f32 %v843_v50, %v825_v40  ;;  %v752_v38 = vsel %vm687_vm6, %v750_v10, %v1138_v51  ;;  %v774_v23 = vsel %vm687_vm6, %v772_v13, %v1131_v48  ;;  %v794_v18 = vsel %vm684_vm5, %v792_v2, %v1081_v29 }
 0x1b3   :  { %v782_v28 = vadd.f32 %v778_v19, %v760_v63  ;;  %v739_v4 = vadd.f32 %v735_v39, %v717_v41  ;;  %v754_v49 = vsel %vm690_vm7, %v752_v38, %v1192_v52  ;;  %v776_v30 = vsel %vm690_vm7, %v774_v23, %v1138_v51  ;;  %v1468_v19 = vld [vmem:[#allocation6_spill] sm:$0xff] }
 0x1b4   :  { %851 = vst [vmem:[%s1453_s3] sm:$0xff] %v847_v25  ;;  %v757_v14 = vmul.f32 %v754_v49, %v1089_v33  ;;  %v779_v26 = vmul.f32 %v776_v30, %v1057_v16  ;;  %v796_v22 = vsel %vm687_vm6, %v794_v18, %v1196_v54  ;;  %v814_v59 = vsel %vm681_vm4, %v1283_v62, %v1158_v60 }
 0x1b5   :  { %v804_v5 = vadd.f32 %v800_v53, %v782_v28  ;;  %v798_v34 = vsel %vm690_vm7, %v796_v22, %v1131_v48  ;;  %v816_v51 = vsel %vm684_vm5, %v814_v59, %v1127_v46  ;;  %v834_v33 = vsel %vm678_vm3, %v1245_v3, %v1192_v52  ;;  %v1463_v52 = vld [vmem:[#allocation7_spill] sm:$0xff] }
 0x1b6   :  { %v761_v31 = vadd.f32 %v757_v14, %v739_v4  ;;  %v801_v16 = vmul.f32 %v798_v34, %v1099_v37  ;;  %v818_v55 = vsel %vm687_vm6, %v816_v51, %v1081_v29  ;;  %v836_v62 = vsel %vm681_vm4, %v834_v33, %v1233_v61 }
 0x1b7   :  { %v826_v1 = vadd.f32 %v822_v6, %v804_v5  ;;  %v820_v48 = vsel %vm690_vm7, %v818_v55, %v1196_v54  ;;  %v838_v56 = vsel %vm684_vm5, %v836_v62, %v1158_v60  ;;  %v696_v21 = vmul.f32 %v692_v0, %v1043_v11  ;;  %v1466_v54 = vld [vmem:[#allocation10_spill] sm:$0xff]  ;;  %v1467_v60 = vld [vmem:[#allocation12_spill] sm:$0xff] }
 0x1b8   :  { %v783_v7 = vadd.f32 %v779_v26, %v761_v31  ;;  %v823_v3 = vmul.f32 %v820_v48, %v1463_v52  ;;  %v840_v37 = vsel %vm687_vm6, %v838_v56, %v1127_v46  ;;  %v714_v45 = vmul.f32 %v710_v27, %v1464_v47  ;;  %v1469_v46 = vld [vmem:[#allocation11_spill] sm:$0xff] }
 0x1b9   :  { %v848_v8 = vadd.f32 %v844_v43, %v826_v1  ;;  %v842_v61 = vsel %vm690_vm7, %v840_v37, %v1081_v29  ;;  %v736_v35 = vmul.f32 %v732_v17, %v1465_v15  ;;  %v758_v44 = vmul.f32 %v754_v49, %v1466_v54  ;;  %v1471_v43 = vld [vmem:[#allocation13_spill] sm:$0xff] }
 0x1ba   :  { %v805_v12 = vadd.f32 %v801_v16, %v783_v7  ;;  %v845_v57 = vmul.f32 %v842_v61, %v1467_v60  ;;  %v718_v11 = vadd.f32 %v714_v45, %v696_v21  ;;  %v780_v53 = vmul.f32 %v776_v30, %v1468_v19 }
 0x1bb   :  { %852 = vst [vmem:[%s1453_s3 + $0x8] sm:$0xff] %v848_v8  ;;  %v802_v50 = vmul.f32 %v798_v34, %v1469_v46  ;;  %v824_v6 = vmul.f32 %v820_v48, %v1470_v9  ;;  %v846_v29 = vmul.f32 %v842_v61, %v1471_v43 }
 0x1bc   :  { %v827_v24 = vadd.f32 %v823_v3, %v805_v12  ;;  %v740_v0 = vadd.f32 %v736_v35, %v718_v11 }
 0x1be   :  { %v849_v27 = vadd.f32 %v845_v57, %v827_v24  ;;  %v762_v17 = vadd.f32 %v758_v44, %v740_v0 }
 0x1c0   :  { %853 = vst [vmem:[%s1453_s3 + $0x10] sm:$0xff] %v849_v27  ;;  %v784_v32 = vadd.f32 %v780_v53, %v762_v17 }
 0x1c2   :  { %v806_v36 = vadd.f32 %v802_v50, %v784_v32 }
 0x1c4   :  { %v828_v20 = vadd.f32 %v824_v6, %v806_v36 }
 0x1c6   :  { %v850_v39 = vadd.f32 %v846_v29, %v828_v20 }
 0x1c8   :  { %854 = vst [vmem:[%s1453_s3 + $0x18] sm:$0xff] %v850_v39 }
 0x1c9   :  { %859 = vsyncpa [#allocation3], 1 }

// kernel: _recon_forward.1
= control target key start
LH: loop header
LB: loop body
LE: loop exit
PB: predicated region body
PF: predicated region fallthrough
CT: control target
= control target key end

     0   :  { %8 = vsyncpa [#allocation3], 0  ;;  %s1487_s0 = inlined_call_operand.vmem [shape: f32[16,32], index: 0, kind: input, shape index: {}]   ;;  %s1488_s1 = inlined_call_operand.hbm [shape: bf16[32,2048], index: 1, kind: input, shape index: {}]   ;;  %s1489_s2 = inlined_call_operand.hbm [shape: bf16[32,2048], index: 2, kind: input, shape index: {}]   ;;  %s1490_s3 = inlined_call_operand.vmem [shape: f32[16,256], index: 3, kind: output, shape index: {}]  }
   0x1   :  { %9 = vsyncpa [#allocation5], 0  ;;  %s1325_s12 = smov [#allocation2]   ;;  %s1277_s16 = scalar_lea.hbm %s1488_s1, 4096 }
   0x2   :  { %s17_s13 = sshll.u32 %s1325_s12, 4  ;;  %p1278_p0 = scmp.ne.s32.totalorder %s1488_s1, %s1277_s16  ;;  %s18_s13 = int_to_ptr.vmem [resolvable:$true] %s17_s13 }
   0x3   :  { %p1281_p1 = scmp.lt.u32.totalorder %s1277_s16, %s1488_s1 }
   0x5   :  { %p1283_p2 = pnand %p1281_p1, %p1278_p0 }
   0x7   :  { %1286 = shalt.err (!%p1283_p2)
}
   0x8   :  { %s1287_s21 = scalar_lea.vmem %s18_s13, 4096  ;;  %p1292_p4 = scmp.lt.s32.totalorder %s18_s13, %s18_s13 }
   0x9   :  { %p1288_p3 = scmp.ne.s32.totalorder %s18_s13, %s1287_s21  ;;  %p1293_p5 = scmp.lt.s32.totalorder %s1287_s21, %s1287_s21 }
   0xb   :  { %p1294_p6 = por %p1293_p5, %p1292_p4 }
   0xd   :  { %p1295_p7 = pnand %p1294_p6, %p1288_p3 }
   0xf   :  { %1298 = shalt.err (!%p1295_p7)
}
  0x10   :  { %s1326_s22 = smov 1024   ;;  %s1327_s23 = smov 64  }
  0x11   :  { %23 = dma.hbm_to_vmem [thread:$0]  %s1488_s1, 4096, %s18_s13, [#allocation3], %s1326_s22, %s1326_s22, %s1327_s23  }
  0x12   :  { %s1328_s26 = smov [#allocation4]   ;;  %s1299_s30 = scalar_lea.hbm %s1489_s2, 4096 }
  0x13   :  { %s29_s27 = sshll.u32 %s1328_s26, 4  ;;  %p1300_p8 = scmp.ne.s32.totalorder %s1489_s2, %s1299_s30  ;;  %s30_s27 = int_to_ptr.vmem [resolvable:$true] %s29_s27 }
  0x14   :  { %p1303_p9 = scmp.lt.u32.totalorder %s1299_s30, %s1489_s2 }
  0x16   :  { %p1305_p10 = pnand %p1303_p9, %p1300_p8 }
  0x18   :  { %1308 = shalt.err (!%p1305_p10)
}
  0x19   :  { %s1309_s8 = scalar_lea.vmem %s30_s27, 4096  ;;  %p1314_p12 = scmp.lt.s32.totalorder %s30_s27, %s30_s27 }
  0x1a   :  { %p1310_p11 = scmp.ne.s32.totalorder %s30_s27, %s1309_s8  ;;  %p1315_p13 = scmp.lt.s32.totalorder %s1309_s8, %s1309_s8 }
  0x1c   :  { %p1316_p0 = por %p1315_p13, %p1314_p12 }
  0x1e   :  { %p1317_p1 = pnand %p1316_p0, %p1310_p11 }
  0x20   :  { %1320 = shalt.err (!%p1317_p1)
}
  0x21   :  { %35 = dma.hbm_to_vmem [thread:$0]  %s1489_s2, 4096, %s30_s27, [#allocation5], %s1326_s22, %s1326_s22, %s1327_s23  }
  0x22   :  { %1321 = dma.done.wait [#allocation3], 4096  }
  0x23   :  { %1322 = vsyncadd [#allocation3], 4294963200 }
  0x24   :  { %1323 = dma.done.wait [#allocation5], 4096  }
  0x25   :  { %1324 = vsyncadd [#allocation5], 4294963200  ;;  %v1329_v0 = vmov 0   ;;  %v46_v1 = vld [vmem:[#allocation2] sm:$0xff]  ;;  %v47_v3 = vld [vmem:[#allocation2 + $0x8] sm:$0xff]  ;;  %vm238_vm0 = vcmask 261120  }
  0x26   :  { %274 = vmatprep.mubr.bf16.mxu0 %v1329_v0  ;;  %317 = vmatprep.mubr.bf16.mxu1 %v1329_v0  ;;  %v54_v2 = vld [vmem:[#allocation2 + $0x40] sm:$0xff]  ;;  %v55_v5 = vld [vmem:[#allocation2 + $0x48] sm:$0xff]  ;;  %v48_v16 = vld [vmem:[#allocation2 + $0x10] sm:$0xff] }
  0x27   :  { %v1193_v4 = vcombine.high %v46_v1, %v54_v2  ;;  %v1192_v6 = vcombine.low %v46_v1, %v54_v2  ;;  %v62_v7 = vld [vmem:[#allocation2 + $0x80] sm:$0xff]  ;;  %v1195_v9 = vcombine.high %v47_v3, %v55_v5  ;;  %v1194_v10 = vcombine.low %v47_v3, %v55_v5  ;;  %v63_v12 = vld [vmem:[#allocation2 + $0x88] sm:$0xff]  ;;  %v56_v17 = vld [vmem:[#allocation2 + $0x50] sm:$0xff] }
  0x28   :  { %v70_v8 = vld [vmem:[#allocation2 + $0xc0] sm:$0xff]  ;;  %v71_v13 = vld [vmem:[#allocation2 + $0xc8] sm:$0xff]  ;;  %v49_v20 = vld [vmem:[#allocation2 + $0x18] sm:$0xff]  ;;  %v1197_v23 = vcombine.high %v48_v16, %v56_v17  ;;  %v1196_v30 = vcombine.low %v48_v16, %v56_v17 }
  0x29   :  { %v1209_v11 = vcombine.high %v62_v7, %v70_v8  ;;  %242 = vmatprep.subr.bf16.mxu0 %v1193_v4  ;;  %v1211_v14 = vcombine.high %v63_v12, %v71_v13  ;;  %v43_v15 = vld [vmem:[%s1487_s0] sm:$0xff]  ;;  %285 = vmatprep.subr.bf16.mxu1 %v1195_v9  ;;  %v1208_v18 = vcombine.low %v62_v7, %v70_v8  ;;  %v44_v19 = vld [vmem:[%s1487_s0 + $0x8] sm:$0xff]  ;;  %v57_v21 = vld [vmem:[#allocation2 + $0x58] sm:$0xff] }
  0x2a   :  { %243 = vmatpush1.bf16.msra.mxu0 %v1192_v6  ;;  %286 = vmatpush1.bf16.msra.mxu1 %v1194_v10  ;;  %v1210_v22 = vcombine.low %v63_v12, %v71_v13  ;;  %v1199_v24 = vcombine.high %v49_v20, %v57_v21  ;;  %v64_v25 = vld [vmem:[#allocation2 + $0x90] sm:$0xff]  ;;  %v1382_v27 = vpack.c.bf16 %v44_v19, %v43_v15  ;;  %v65_v28 = vld [vmem:[#allocation2 + $0x98] sm:$0xff]  ;;  %v50_v34 = vld [vmem:[#allocation2 + $0x20] sm:$0xff] }
  0x2b   :  { %244 = vmatprep.subr.bf16.mxu0 %v1209_v11  ;;  %287 = vmatprep.subr.bf16.mxu1 %v1211_v14  ;;  %v72_v26 = vld [vmem:[#allocation2 + $0xd0] sm:$0xff]  ;;  %v73_v29 = vld [vmem:[#allocation2 + $0xd8] sm:$0xff]  ;;  %v1198_v31 = vcombine.low %v49_v20, %v57_v21  ;;  %v58_v35 = vld [vmem:[#allocation2 + $0x60] sm:$0xff] }
  0x2c   :  { %v1213_v32 = vcombine.high %v64_v25, %v72_v26  ;;  %v1215_v33 = vcombine.high %v65_v28, %v73_v29  ;;  %v51_v36 = vld [vmem:[#allocation2 + $0x28] sm:$0xff]  ;;  %v1212_v38 = vcombine.low %v64_v25, %v72_v26  ;;  %v1214_v39 = vcombine.low %v65_v28, %v73_v29  ;;  %v66_v42 = vld [vmem:[#allocation2 + $0xa0] sm:$0xff]  ;;  %v52_v50 = vld [vmem:[#allocation2 + $0x30] sm:$0xff] }
  0x2d   :  { %v59_v37 = vld [vmem:[#allocation2 + $0x68] sm:$0xff]  ;;  %v1201_v40 = vcombine.high %v50_v34, %v58_v35  ;;  %v74_v43 = vld [vmem:[#allocation2 + $0xe0] sm:$0xff]  ;;  %v1200_v46 = vcombine.low %v50_v34, %v58_v35  ;;  %v60_v51 = vld [vmem:[#allocation2 + $0x70] sm:$0xff] }
  0x2e   :  { %245 = vmatpush1.bf16.msra.mxu0 %v1208_v18  ;;  %288 = vmatpush1.bf16.msra.mxu1 %v1210_v22  ;;  %v1203_v41 = vcombine.high %v51_v36, %v59_v37  ;;  %v67_v44 = vld [vmem:[#allocation2 + $0xa8] sm:$0xff]  ;;  %v1202_v47 = vcombine.low %v51_v36, %v59_v37  ;;  %v1217_v48 = vcombine.high %v66_v42, %v74_v43  ;;  %v53_v52 = vld [vmem:[#allocation2 + $0x38] sm:$0xff]  ;;  %v68_v58 = vld [vmem:[#allocation2 + $0xb0] sm:$0xff] }
  0x2f   :  { %328 = vmatprep.subr.bf16.mxu0 %v1197_v23  ;;  %371 = vmatprep.subr.bf16.mxu1 %v1199_v24  ;;  %v75_v45 = vld [vmem:[#allocation2 + $0xe8] sm:$0xff]  ;;  %v61_v53 = vld [vmem:[#allocation2 + $0x78] sm:$0xff]  ;;  %v1216_v54 = vcombine.low %v66_v42, %v74_v43  ;;  %v1205_v56 = vcombine.high %v52_v50, %v60_v51  ;;  %v76_v59 = vld [vmem:[#allocation2 + $0xf0] sm:$0xff]  ;;  %v1204_v62 = vcombine.low %v52_v50, %v60_v51 }
  0x30   :  { %v1219_v49 = vcombine.high %v67_v44, %v75_v45  ;;  %v1218_v55 = vcombine.low %v67_v44, %v75_v45  ;;  %v1207_v57 = vcombine.high %v53_v52, %v61_v53  ;;  %v69_v60 = vld [vmem:[#allocation2 + $0xb8] sm:$0xff]  ;;  %v1206_v63 = vcombine.low %v53_v52, %v61_v53  ;;  %v586_v3 = vld [vmem:[#allocation4] sm:$0xff]  ;;  %v587_v5 = vld [vmem:[#allocation4 + $0x8] sm:$0xff] }
  0x31   :  { %1224 = vmatmul.mubr.msk.bf16.vlgmr.msra.gmra.mrb[0].mxu0 %vm238_vm0, %v1382_v27  ;;  %1225 = vmatmul.mubr.msk.bf16.vlgmr.msra.gmra.mrb[0].mxu1 %vm238_vm0, %v1382_v27  ;;  %v77_v61 = vld [vmem:[#allocation2 + $0xf8] sm:$0xff]  ;;  %v1221_v1 = vcombine.high %v68_v58, %v76_v59  ;;  %v594_v4 = vld [vmem:[#allocation4 + $0x40] sm:$0xff]  ;;  %v595_v6 = vld [vmem:[#allocation4 + $0x48] sm:$0xff]  ;;  %v1220_v7 = vcombine.low %v68_v58, %v76_v59 }
  0x32   :  { %329 = vmatpush1.bf16.msra.mxu0 %v1196_v30  ;;  %372 = vmatpush1.bf16.msra.mxu1 %v1198_v31  ;;  %v1223_v2 = vcombine.high %v69_v60, %v77_v61  ;;  %v1222_v8 = vcombine.low %v69_v60, %v77_v61  ;;  %v1233_v9 = vcombine.high %v586_v3, %v594_v4  ;;  %v602_v11 = vld [vmem:[#allocation4 + $0x80] sm:$0xff]  ;;  %v603_v13 = vld [vmem:[#allocation4 + $0x88] sm:$0xff]  ;;  %v588_v19 = vld [vmem:[#allocation4 + $0x10] sm:$0xff] }
  0x33   :  { %330 = vmatprep.subr.bf16.mxu0 %v1213_v32  ;;  %373 = vmatprep.subr.bf16.mxu1 %v1215_v33  ;;  %v1235_v10 = vcombine.high %v587_v5, %v595_v6  ;;  %v610_v12 = vld [vmem:[#allocation4 + $0xc0] sm:$0xff]  ;;  %v611_v14 = vld [vmem:[#allocation4 + $0xc8] sm:$0xff]  ;;  %v1232_v15 = vcombine.low %v586_v3, %v594_v4  ;;  %v1234_v16 = vcombine.low %v587_v5, %v595_v6  ;;  %v596_v20 = vld [vmem:[#allocation4 + $0x50] sm:$0xff] }
  0x34   :  { %360 = vmatprep.mubr.bf16.mxu0 %v1329_v0  ;;  %403 = vmatprep.mubr.bf16.mxu1 %v1329_v0  ;;  %v1249_v17 = vcombine.high %v602_v11, %v610_v12  ;;  %v1251_v18 = vcombine.high %v603_v13, %v611_v14  ;;  %v589_v21 = vld [vmem:[#allocation4 + $0x18] sm:$0xff]  ;;  %v1248_v23 = vcombine.low %v602_v11, %v610_v12  ;;  %v604_v28 = vld [vmem:[#allocation4 + $0x90] sm:$0xff]  ;;  %v590_v36 = vld [vmem:[#allocation4 + $0x20] sm:$0xff] }
  0x35   :  { %v597_v22 = vld [vmem:[#allocation4 + $0x58] sm:$0xff]  ;;  %v1250_v24 = vcombine.low %v603_v13, %v611_v14  ;;  %v1237_v25 = vcombine.high %v588_v19, %v596_v20  ;;  %v612_v29 = vld [vmem:[#allocation4 + $0xd0] sm:$0xff]  ;;  %v1236_v32 = vcombine.low %v588_v19, %v596_v20  ;;  %v598_v37 = vld [vmem:[#allocation4 + $0x60] sm:$0xff] }
  0x36   :  { %331 = vmatpush1.bf16.msra.mxu0 %v1212_v38  ;;  %374 = vmatpush1.bf16.msra.mxu1 %v1214_v39  ;;  %v1239_v26 = vcombine.high %v589_v21, %v597_v22  ;;  %v605_v30 = vld [vmem:[#allocation4 + $0x98] sm:$0xff]  ;;  %v1238_v33 = vcombine.low %v589_v21, %v597_v22  ;;  %v1253_v34 = vcombine.high %v604_v28, %v612_v29  ;;  %v591_v38 = vld [vmem:[#allocation4 + $0x28] sm:$0xff]  ;;  %v606_v44 = vld [vmem:[#allocation4 + $0xa0] sm:$0xff] }
  0x37   :  { %414 = vmatprep.subr.bf16.mxu0 %v1201_v40  ;;  %457 = vmatprep.subr.bf16.mxu1 %v1203_v41  ;;  %v613_v31 = vld [vmem:[#allocation4 + $0xd8] sm:$0xff]  ;;  %v599_v39 = vld [vmem:[#allocation4 + $0x68] sm:$0xff]  ;;  %v1252_v40 = vcombine.low %v604_v28, %v612_v29  ;;  %v1241_v42 = vcombine.high %v590_v36, %v598_v37  ;;  %v614_v45 = vld [vmem:[#allocation4 + $0xe0] sm:$0xff] }
  0x38   :  { %v1255_v35 = vcombine.high %v605_v30, %v613_v31  ;;  %v1254_v41 = vcombine.low %v605_v30, %v613_v31  ;;  %v1243_v43 = vcombine.high %v591_v38, %v599_v39  ;;  %v1257_v50 = vcombine.high %v606_v44, %v614_v45  ;;  %v592_v52 = vld [vmem:[#allocation4 + $0x30] sm:$0xff] }
  0x39   :  { %1226 = vmatmul.mubr.msk.bf16.vlgmr.msra.gmra.mrb[4].mxu0 %vm238_vm0, %v1382_v27  ;;  %1227 = vmatmul.mubr.msk.bf16.vlgmr.msra.gmra.mrb[4].mxu1 %vm238_vm0, %v1382_v27  ;;  %v600_v53 = vld [vmem:[#allocation4 + $0x70] sm:$0xff] }
  0x3a   :  { %415 = vmatpush1.bf16.msra.mxu0 %v1200_v46  ;;  %458 = vmatpush1.bf16.msra.mxu1 %v1202_v47  ;;  %v607_v46 = vld [vmem:[#allocation4 + $0xa8] sm:$0xff]  ;;  %v1245_v58 = vcombine.high %v592_v52, %v600_v53  ;;  %v608_v60 = vld [vmem:[#allocation4 + $0xb0] sm:$0xff] }
  0x3b   :  { %416 = vmatprep.subr.bf16.mxu0 %v1217_v48  ;;  %459 = vmatprep.subr.bf16.mxu1 %v1219_v49  ;;  %v615_v47 = vld [vmem:[#allocation4 + $0xe8] sm:$0xff]  ;;  %v1240_v48 = vcombine.low %v590_v36, %v598_v37  ;;  %v1242_v49 = vcombine.low %v591_v38, %v599_v39  ;;  %v616_v61 = vld [vmem:[#allocation4 + $0xf0] sm:$0xff] }
  0x3c   :  { %446 = vmatprep.mubr.bf16.mxu0 %v1329_v0  ;;  %489 = vmatprep.mubr.bf16.mxu1 %v1329_v0  ;;  %v1259_v51 = vcombine.high %v607_v46, %v615_v47  ;;  %v1261_v3 = vcombine.high %v608_v60, %v616_v61  ;;  %v1260_v5 = vcombine.low %v608_v60, %v616_v61 }
  0x3e   :  { %417 = vmatpush1.bf16.msra.mxu0 %v1216_v54  ;;  %460 = vmatpush1.bf16.msra.mxu1 %v1218_v55  ;;  %v593_v54 = vld [vmem:[#allocation4 + $0x38] sm:$0xff] }
  0x3f   :  { %500 = vmatprep.subr.bf16.mxu0 %v1205_v56  ;;  %543 = vmatprep.subr.bf16.mxu1 %v1207_v57  ;;  %v601_v55 = vld [vmem:[#allocation4 + $0x78] sm:$0xff]  ;;  %v1256_v56 = vcombine.low %v606_v44, %v614_v45  ;;  %v1258_v57 = vcombine.low %v607_v46, %v615_v47 }
  0x40   :  { %v1247_v59 = vcombine.high %v593_v54, %v601_v55 }
  0x41   :  { %1228 = vmatmul.mubr.msk.bf16.vlgmr.msra.gmra.mrb[8].mxu0 %vm238_vm0, %v1382_v27  ;;  %1229 = vmatmul.mubr.msk.bf16.vlgmr.msra.gmra.mrb[8].mxu1 %vm238_vm0, %v1382_v27 }
  0x42   :  { %501 = vmatpush1.bf16.msra.mxu0 %v1204_v62  ;;  %544 = vmatpush1.bf16.msra.mxu1 %v1206_v63  ;;  %v609_v62 = vld [vmem:[#allocation4 + $0xb8] sm:$0xff] }
  0x43   :  { %502 = vmatprep.subr.bf16.mxu0 %v1221_v1  ;;  %545 = vmatprep.subr.bf16.mxu1 %v1223_v2  ;;  %v617_v63 = vld [vmem:[#allocation4 + $0xf8] sm:$0xff]  ;;  %v1244_v1 = vcombine.low %v592_v52, %v600_v53  ;;  %v1246_v2 = vcombine.low %v593_v54, %v601_v55 }
  0x44   :  { %532 = vmatprep.mubr.bf16.mxu0 %v1329_v0  ;;  %575 = vmatprep.mubr.bf16.mxu1 %v1329_v0  ;;  %v1263_v4 = vcombine.high %v609_v62, %v617_v63  ;;  %v1262_v6 = vcombine.low %v609_v62, %v617_v63 }
  0x46   :  { %503 = vmatpush1.bf16.msra.mxu0 %v1220_v7  ;;  %546 = vmatpush1.bf16.msra.mxu1 %v1222_v8 }
  0x47   :  { %778 = vmatprep.subr.bf16.mxu0 %v1233_v9  ;;  %821 = vmatprep.subr.bf16.mxu1 %v1235_v10 }
  0x49   :  { %1230 = vmatmul.mubr.msk.bf16.vlgmr.msra.gmra.mrb[12].mxu0 %vm238_vm0, %v1382_v27  ;;  %1231 = vmatmul.mubr.msk.bf16.vlgmr.msra.gmra.mrb[12].mxu1 %vm238_vm0, %v1382_v27 }
  0x4a   :  { %779 = vmatpush1.bf16.msra.mxu0 %v1232_v15  ;;  %822 = vmatpush1.bf16.msra.mxu1 %v1234_v16 }
  0x4b   :  { %780 = vmatprep.subr.bf16.mxu0 %v1249_v17  ;;  %823 = vmatprep.subr.bf16.mxu1 %v1251_v18 }
  0x4c   :  { %810 = vmatprep.mubr.bf16.mxu0 %v1329_v0  ;;  %853 = vmatprep.mubr.bf16.mxu1 %v1329_v0 }
  0x4e   :  { %781 = vmatpush1.bf16.msra.mxu0 %v1248_v23  ;;  %824 = vmatpush1.bf16.msra.mxu1 %v1250_v24 }
  0x4f   :  { %864 = vmatprep.subr.bf16.mxu0 %v1237_v25  ;;  %907 = vmatprep.subr.bf16.mxu1 %v1239_v26 }
  0x51   :  { %1264 = vmatmul.mubr.msk.bf16.vlgmr.msra.gmra.mrb[16].mxu0 %vm238_vm0, %v1382_v27  ;;  %1265 = vmatmul.mubr.msk.bf16.vlgmr.msra.gmra.mrb[16].mxu1 %vm238_vm0, %v1382_v27 }
  0x52   :  { %865 = vmatpush1.bf16.msra.mxu0 %v1236_v32  ;;  %908 = vmatpush1.bf16.msra.mxu1 %v1238_v33 }
  0x53   :  { %866 = vmatprep.subr.bf16.mxu0 %v1253_v34  ;;  %909 = vmatprep.subr.bf16.mxu1 %v1255_v35 }
  0x54   :  { %896 = vmatprep.mubr.bf16.mxu0 %v1329_v0  ;;  %939 = vmatprep.mubr.bf16.mxu1 %v1329_v0 }
  0x56   :  { %867 = vmatpush1.bf16.msra.mxu0 %v1252_v40  ;;  %910 = vmatpush1.bf16.msra.mxu1 %v1254_v41 }
  0x57   :  { %950 = vmatprep.subr.bf16.mxu0 %v1241_v42  ;;  %993 = vmatprep.subr.bf16.mxu1 %v1243_v43 }
  0x59   :  { %1266 = vmatmul.mubr.msk.bf16.vlgmr.msra.gmra.mrb[20].mxu0 %vm238_vm0, %v1382_v27  ;;  %1267 = vmatmul.mubr.msk.bf16.vlgmr.msra.gmra.mrb[20].mxu1 %vm238_vm0, %v1382_v27 }
  0x5a   :  { %951 = vmatpush1.bf16.msra.mxu0 %v1240_v48  ;;  %994 = vmatpush1.bf16.msra.mxu1 %v1242_v49 }
  0x5b   :  { %952 = vmatprep.subr.bf16.mxu0 %v1257_v50  ;;  %995 = vmatprep.subr.bf16.mxu1 %v1259_v51 }
  0x5c   :  { %982 = vmatprep.mubr.bf16.mxu0 %v1329_v0  ;;  %1025 = vmatprep.mubr.bf16.mxu1 %v1329_v0 }
  0x5e   :  { %953 = vmatpush1.bf16.msra.mxu0 %v1256_v56  ;;  %996 = vmatpush1.bf16.msra.mxu1 %v1258_v57 }
  0x5f   :  { %1036 = vmatprep.subr.bf16.mxu0 %v1245_v58  ;;  %1079 = vmatprep.subr.bf16.mxu1 %v1247_v59 }
  0x61   :  { %1268 = vmatmul.mubr.msk.bf16.vlgmr.msra.gmra.mrb[24].mxu0 %vm238_vm0, %v1382_v27  ;;  %1269 = vmatmul.mubr.msk.bf16.vlgmr.msra.gmra.mrb[24].mxu1 %vm238_vm0, %v1382_v27 }
  0x62   :  { %1037 = vmatpush1.bf16.msra.mxu0 %v1244_v1  ;;  %1080 = vmatpush1.bf16.msra.mxu1 %v1246_v2 }
  0x63   :  { %1038 = vmatprep.subr.bf16.mxu0 %v1261_v3  ;;  %1081 = vmatprep.subr.bf16.mxu1 %v1263_v4 }
  0x64   :  { %1068 = vmatprep.mubr.bf16.mxu0 %v1329_v0  ;;  %1111 = vmatprep.mubr.bf16.mxu1 %v1329_v0 }
  0x66   :  { %1039 = vmatpush1.bf16.msra.mxu0 %v1260_v5  ;;  %1082 = vmatpush1.bf16.msra.mxu1 %v1262_v6 }
  0x69   :  { %1270 = vmatmul.mubr.msk.bf16.vlgmr.msra.gmra.mrb[28].mxu0 %vm238_vm0, %v1382_v27  ;;  %1271 = vmatmul.mubr.msk.bf16.vlgmr.msra.gmra.mrb[28].mxu1 %vm238_vm0, %v1382_v27 }
 0x104   :  { %v276_v7 = vpop.f32.mrb[0].mxu0  ;;  %v319_v8 = vpop.f32.mrb[0].mxu1 }
 0x105   :  { %v278_v9 = vpop.f32.mrb[1].mxu0  ;;  %v321_v10 = vpop.f32.mrb[1].mxu1 }
 0x106   :  { %v280_v11 = vpop.f32.mrb[2].mxu0  ;;  %v323_v12 = vpop.f32.mrb[2].mxu1 }
 0x107   :  { %v282_v13 = vpop.f32.mrb[3].mxu0  ;;  %v325_v14 = vpop.f32.mrb[3].mxu1 }
 0x10c   :  { %v362_v15 = vpop.f32.mrb[4].mxu0  ;;  %v405_v16 = vpop.f32.mrb[4].mxu1 }
 0x10d   :  { %v364_v17 = vpop.f32.mrb[5].mxu0  ;;  %v407_v0 = vpop.f32.mrb[5].mxu1 }
 0x10e   :  { %v366_v18 = vpop.f32.mrb[6].mxu0  ;;  %v409_v19 = vpop.f32.mrb[6].mxu1 }
 0x10f   :  { %v368_v20 = vpop.f32.mrb[7].mxu0  ;;  %v411_v21 = vpop.f32.mrb[7].mxu1 }
 0x114   :  { %v448_v22 = vpop.f32.mrb[8].mxu0  ;;  %v1430_v23 = vpop.f32.mrb[8].mxu1 }
 0x115   :  { %v1432_v27 = vpop.f32.mrb[9].mxu0  ;;  %v1434_v24 = vpop.f32.mrb[9].mxu1 }
 0x116   :  { %v1436_v25 = vpop.f32.mrb[10].mxu0  ;;  %v1438_v26 = vpop.f32.mrb[10].mxu1 }
 0x117   :  { %v1440_v28 = vpop.f32.mrb[11].mxu0  ;;  %v1442_v29 = vpop.f32.mrb[11].mxu1 }
 0x11c   :  { %v1444_v30 = vpop.f32.mrb[12].mxu0  ;;  %v1446_v31 = vpop.f32.mrb[12].mxu1 }
 0x11d   :  { %v1448_v32 = vpop.f32.mrb[13].mxu0  ;;  %v1450_v33 = vpop.f32.mrb[13].mxu1 }
 0x11e   :  { %v1452_v34 = vpop.f32.mrb[14].mxu0  ;;  %v1454_v35 = vpop.f32.mrb[14].mxu1 }
 0x11f   :  { %v1456_v36 = vpop.f32.mrb[15].mxu0  ;;  %v1458_v37 = vpop.f32.mrb[15].mxu1 }
 0x124   :  { %v812_v38 = vpop.f32.mrb[16].mxu0  ;;  %v855_v40 = vpop.f32.mrb[16].mxu1 }
 0x125   :  { %v1122_v39 = vmul.f32 %v812_v38, %v276_v7  ;;  %v814_v41 = vpop.f32.mrb[17].mxu0  ;;  %v1126_v42 = vmul.f32 %v855_v40, %v319_v8  ;;  %v857_v44 = vpop.f32.mrb[17].mxu1 }
 0x126   :  { %v1123_v43 = vmul.f32 %v814_v41, %v278_v9  ;;  %v816_v45 = vpop.f32.mrb[18].mxu0  ;;  %v1127_v46 = vmul.f32 %v857_v44, %v321_v10  ;;  %v859_v48 = vpop.f32.mrb[18].mxu1 }
 0x127   :  { %v1124_v47 = vmul.f32 %v816_v45, %v280_v11  ;;  %v818_v49 = vpop.f32.mrb[19].mxu0  ;;  %v1130_v50 = vadd.f32 %v1126_v42, %v1122_v39  ;;  %v1128_v51 = vmul.f32 %v859_v48, %v323_v12  ;;  %v861_v53 = vpop.f32.mrb[19].mxu1 }
 0x128   :  { %v1125_v52 = vmul.f32 %v818_v49, %v282_v13  ;;  %v1131_v54 = vadd.f32 %v1127_v46, %v1123_v43  ;;  %v1129_v55 = vmul.f32 %v861_v53, %v325_v14 }
 0x129   :  { %v1132_v56 = vadd.f32 %v1128_v51, %v1124_v47 }
 0x12a   :  { %v1133_v57 = vadd.f32 %v1129_v55, %v1125_v52 }
 0x12c   :  { %v898_v58 = vpop.f32.mrb[20].mxu0  ;;  %v941_v60 = vpop.f32.mrb[20].mxu1 }
 0x12d   :  { %v1134_v59 = vmul.f32 %v898_v58, %v362_v15  ;;  %v900_v61 = vpop.f32.mrb[21].mxu0  ;;  %v1142_v62 = vmul.f32 %v941_v60, %v405_v16  ;;  %v943_v1 = vpop.f32.mrb[21].mxu1 }
 0x12e   :  { %v1135_v63 = vmul.f32 %v900_v61, %v364_v17  ;;  %v902_v2 = vpop.f32.mrb[22].mxu0  ;;  %v1143_v4 = vmul.f32 %v943_v1, %v407_v0  ;;  %v945_v6 = vpop.f32.mrb[22].mxu1 }
 0x12f   :  { %v1138_v3 = vadd.f32 %v1134_v59, %v1130_v50  ;;  %v1136_v5 = vmul.f32 %v902_v2, %v366_v18  ;;  %v904_v7 = vpop.f32.mrb[23].mxu0  ;;  %v1144_v9 = vmul.f32 %v945_v6, %v409_v19  ;;  %v947_v11 = vpop.f32.mrb[23].mxu1 }
 0x130   :  { %v1139_v8 = vadd.f32 %v1135_v63, %v1131_v54  ;;  %v1137_v10 = vmul.f32 %v904_v7, %v368_v20  ;;  %v1145_v14 = vmul.f32 %v947_v11, %v411_v21 }
 0x131   :  { %v1146_v12 = vadd.f32 %v1142_v62, %v1138_v3  ;;  %v1140_v13 = vadd.f32 %v1136_v5, %v1132_v56 }
 0x132   :  { %v1147_v38 = vadd.f32 %v1143_v4, %v1139_v8  ;;  %v1141_v15 = vadd.f32 %v1137_v10, %v1133_v57 }
 0x133   :  { %v1148_v39 = vadd.f32 %v1144_v9, %v1140_v13 }
 0x134   :  { %v1149_v40 = vadd.f32 %v1145_v14, %v1141_v15  ;;  %v984_v16 = vpop.f32.mrb[24].mxu0  ;;  %v1027_v41 = vpop.f32.mrb[24].mxu1 }
 0x135   :  { %v1150_v17 = vmul.f32 %v984_v16, %v448_v22  ;;  %v986_v42 = vpop.f32.mrb[25].mxu0  ;;  %v1158_v0 = vmul.f32 %v1027_v41, %v1430_v23  ;;  %v1029_v43 = vpop.f32.mrb[25].mxu1 }
 0x136   :  { %v1151_v18 = vmul.f32 %v986_v42, %v1432_v27  ;;  %v988_v44 = vpop.f32.mrb[26].mxu0  ;;  %v1159_v20 = vmul.f32 %v1029_v43, %v1434_v24  ;;  %v1031_v21 = vpop.f32.mrb[26].mxu1 }
 0x137   :  { %v1154_v19 = vadd.f32 %v1150_v17, %v1146_v12  ;;  %v1152_v45 = vmul.f32 %v988_v44, %v1436_v25  ;;  %v990_v46 = vpop.f32.mrb[27].mxu0  ;;  %v1160_v48 = vmul.f32 %v1031_v21, %v1438_v26  ;;  %v1033_v49 = vpop.f32.mrb[27].mxu1 }
 0x138   :  { %v1155_v47 = vadd.f32 %v1151_v18, %v1147_v38  ;;  %v1153_v22 = vmul.f32 %v990_v46, %v1440_v28  ;;  %v1161_v23 = vmul.f32 %v1033_v49, %v1442_v29 }
 0x139   :  { %v1162_v50 = vadd.f32 %v1158_v0, %v1154_v19  ;;  %v1156_v51 = vadd.f32 %v1152_v45, %v1148_v39 }
 0x13a   :  { %v1163_v27 = vadd.f32 %v1159_v20, %v1155_v47  ;;  %v1157_v52 = vadd.f32 %v1153_v22, %v1149_v40 }
 0x13b   :  { %v1164_v53 = vadd.f32 %v1160_v48, %v1156_v51 }
 0x13c   :  { %v1165_v54 = vadd.f32 %v1161_v23, %v1157_v52  ;;  %v1070_v55 = vpop.f32.mrb[28].mxu0  ;;  %v1113_v25 = vpop.f32.mrb[28].mxu1 }
 0x13d   :  { %v1166_v24 = vmul.f32 %v1070_v55, %v1444_v30  ;;  %v1072_v56 = vpop.f32.mrb[29].mxu0  ;;  %v1174_v57 = vmul.f32 %v1113_v25, %v1446_v31  ;;  %v1115_v58 = vpop.f32.mrb[29].mxu1 }
 0x13e   :  { %v1167_v26 = vmul.f32 %v1072_v56, %v1448_v32  ;;  %v1074_v28 = vpop.f32.mrb[30].mxu0  ;;  %v1175_v60 = vmul.f32 %v1115_v58, %v1450_v33  ;;  %v1117_v61 = vpop.f32.mrb[30].mxu1 }
 0x13f   :  { %v1170_v59 = vadd.f32 %v1166_v24, %v1162_v50  ;;  %v1168_v29 = vmul.f32 %v1074_v28, %v1452_v34  ;;  %v1076_v62 = vpop.f32.mrb[31].mxu0  ;;  %v1176_v1 = vmul.f32 %v1117_v61, %v1454_v35  ;;  %v1119_v2 = vpop.f32.mrb[31].mxu1 }
 0x140   :  { %v1171_v63 = vadd.f32 %v1167_v26, %v1163_v27  ;;  %v1169_v30 = vmul.f32 %v1076_v62, %v1456_v36  ;;  %v1177_v31 = vmul.f32 %v1119_v2, %v1458_v37 }
 0x141   :  { %v1178_v3 = vadd.f32 %v1174_v57, %v1170_v59  ;;  %v1172_v4 = vadd.f32 %v1168_v29, %v1164_v53 }
 0x142   :  { %v1179_v32 = vadd.f32 %v1175_v60, %v1171_v63  ;;  %v1173_v5 = vadd.f32 %v1169_v30, %v1165_v54 }
 0x143   :  { %1182 = vst [vmem:[%s1490_s3] sm:$0xff] %v1178_v3  ;;  %v1180_v33 = vadd.f32 %v1176_v1, %v1172_v4 }
 0x144   :  { %1183 = vst [vmem:[%s1490_s3 + $0x8] sm:$0xff] %v1179_v32  ;;  %v1181_v34 = vadd.f32 %v1177_v31, %v1173_v5 }
 0x145   :  { %1184 = vst [vmem:[%s1490_s3 + $0x10] sm:$0xff] %v1180_v33 }
 0x146   :  { %1185 = vst [vmem:[%s1490_s3 + $0x18] sm:$0xff] %v1181_v34 }
 0x147   :  { %1190 = vsyncpa [#allocation3], 1 }
 0x148   :  { %1191 = vsyncpa [#allocation5], 1 }

</bundles_post_ra>
